<compile_context>
chip_gen: v7x
topology: tpu7x:2x2x1
jax: 0.10.0
libtpu: 0.0.40
codegen_flags: <defaults>
</compile_context>

<pallas_src>
import functools

import jax
import jax.numpy as jnp
import numpy as np
from jax.experimental import pallas as pl
from jax.experimental.pallas import tpu as pltpu


# ---------------------------------------------------------------------------
# Pallas kernel
# ---------------------------------------------------------------------------
def _disc_kernel(h_ref, m_ref, w_ref, b_ref, oh_ref, out_ref,
                 hsum_ref, msum_ref, *, num_tasks):
    ti = pl.program_id(1)
    nt = pl.num_programs(1)

    # ---- init per-batch-block accumulators at the first time tile ----------
    @pl.when(ti == 0)
    def _init():
        hsum_ref[...] = jnp.zeros_like(hsum_ref)
        msum_ref[...] = jnp.zeros_like(msum_ref)

    # ---- masked-sum accumulation for this (BB, TT, D) tile ------------------
    h = h_ref[...]                       # (BB, TT, D)  native dtype (e.g. bf16)
    m = m_ref[...]                       # (BB, 1, TT)  same dtype, values 0/1
    # Contraction over the time tile on the MXU; exact bf16 products, f32 acc.
    hsum_ref[...] += jnp.einsum("bqt,btd->bqd", m, h,
                                preferred_element_type=jnp.float32)
    msum_ref[...] += jnp.sum(m.astype(jnp.float32), axis=2)        # (BB, 1)

    # ---- epilogue at the last time tile: encode -> project -> losses --------
    @pl.when(ti == nt - 1)
    def _finalize():
        # BagOfEmbeddings masked mean.  1e-6 clamp matches the reference;
        # fully-masked / padded rows have hsum == 0, so reps stays 0 (finite).
        inv_cnt = pl.reciprocal(jnp.maximum(msum_ref[...], 1e-6), approx=False)
        reps = hsum_ref[...][:, 0, :] * inv_cnt                      # (BB, D)

        # FeedForward (1 layer, ReLU); W/b zero-padded to Kp lane-dense lanes.
        z = jnp.dot(reps, w_ref[...],
                    preferred_element_type=jnp.float32) + b_ref[...]  # (BB, Kp)
        z = jnp.maximum(z, 0.0)

        col = jax.lax.broadcasted_iota(jnp.int32, z.shape, 1)
        kvalid = col < num_tasks
        zm = jnp.where(kvalid, z, jnp.float32(-1e30))   # padded lanes can't win

        # log_softmax over the real K classes only (torch.nn.LogSoftmax on 2-D).
        zmax = jnp.max(zm, axis=1, keepdims=True)
        sumexp = jnp.sum(jnp.where(kvalid, jnp.exp(zm - zmax), 0.0),
                         axis=1, keepdims=True)
        logp = zm - (zmax + jnp.log(sumexp))                           # (BB, Kp)

        oh = oh_ref[...]                                               # (BB, Kp)
        row_valid = jnp.sum(oh, axis=1, keepdims=True)  # 1.0 for real rows

        # NLLLoss partial: -log p[label] per row (0 for padded rows, oh == 0).
        d_row = -jnp.sum(oh * logp, axis=1, keepdims=True)

        # KLDivLoss(batchmean) vs uniform target: per-row class sum.
        u = jnp.float32(1.0 / num_tasks)
        log_u = jnp.float32(np.log(1.0 / num_tasks))
        g_row = row_valid * jnp.sum(
            jnp.where(kvalid, u * (log_u - logp), 0.0), axis=1, keepdims=True)

        # accuracy: first-occurrence argmax vs label index.
        is_max = logp >= jnp.max(logp, axis=1, keepdims=True)
        idx = jnp.min(jnp.where(is_max, col, z.shape[1]), axis=1, keepdims=True)
        lbl = jnp.sum(oh * col.astype(jnp.float32), axis=1, keepdims=True)
        a_row = row_valid * (idx.astype(jnp.float32) == lbl).astype(jnp.float32)

        # Pack per-row stats into one lane-dense (BB, 128) block:
        # lane 0 = NLL, lane 1 = KL, lane 2 = correct flag, rest = 0.
        lane = jax.lax.broadcasted_iota(jnp.int32, out_ref.shape, 1)
        out_ref[...] = (jnp.where(lane == 0, d_row, 0.0)
                        + jnp.where(lane == 1, g_row, 0.0)
                        + jnp.where(lane == 2, a_row, 0.0))


# ---------------------------------------------------------------------------
# Wrapper: per-generation VMEM budget, tile choice, padding, pallas_call.
# ---------------------------------------------------------------------------
def _round_up(x, m):
    return ((x + m - 1) // m) * m


def _vmem_limit_bytes():
    cap = 64 * 1024 * 1024                      # conservative fallback (v7x-sized)
    try:
        cap = int(getattr(pltpu.get_tpu_info(), "vmem_capacity_bytes", cap))
    except Exception:
        pass
    # ~75% of physical, capped: ~48 MiB on v7x (64 MiB), ~96 MiB on v5e/v6e (128 MiB).
    return min((cap * 3) // 4, 100 * 1024 * 1024)


def _est_vmem_bytes(BB, TT, D, Kp, h_item, m_item):
    hid = 2 * BB * TT * D * h_item              # double-buffered hidden tiles
    msk = 2 * BB * 16 * TT * m_item             # (BB,1,TT) mask tiles (sublane pad)
    wgt = 2 * (D * Kp + 8 * Kp) * 4             # resident W + b
    oh = 2 * BB * Kp * 4                        # one-hot labels
    out = 2 * BB * 128 * 4
    scr = BB * 8 * D * 4 + BB * 128 * 4         # hsum (sublane pad) + msum scratch
    return hid + msk + wgt + oh + out + scr


def _choose_tiles(B, T, D, Kp, h_item, m_item, batch_block, tile_bytes, budget):
    # Batch tile: multiple of 8; prefer >= 2 batch blocks so the "parallel"
    # axis can shard across v7x's two TensorCores.
    BB = max(8, (min(batch_block, _round_up(B, 8)) // 8) * 8)
    while _round_up(B, 8) > 8 and pl.cdiv(_round_up(B, 8), BB) < 2 and BB > 8:
        BB = max(8, ((BB // 2) // 8) * 8)

    # Time tile: multiple of 128 (lane-dense mask), sized toward ~tile_bytes
    # per hidden buffer, preferring the candidate that minimizes T padding.
    tt_cap = max(128, min(((tile_bytes // max(1, BB * D * h_item)) // 128) * 128,
                          _round_up(T, 128)))
    TT, best_pad = 128, None
    for cand in range(128, tt_cap + 1, 128):
        padded = _round_up(T, cand)
        if best_pad is None or padded <= best_pad:
            TT, best_pad = cand, padded

    # Keep the double-buffer estimate inside the VMEM budget.
    while TT > 128 and _est_vmem_bytes(BB, TT, D, Kp, h_item, m_item) > budget:
        TT -= 128
    while BB > 8 and _est_vmem_bytes(BB, TT, D, Kp, h_item, m_item) > budget:
        BB -= 8
    return BB, TT


def task_discriminator_forward(hidden_states, mask, W, b, labels, *,
                               batch_block=64,
                               time_block_bytes=2 * 1024 * 1024):
    B, T, D = hidden_states.shape
    K = W.shape[1]
    Kp = _round_up(K, 128)
    h_dtype = hidden_states.dtype
    h_item = jnp.dtype(h_dtype).itemsize

    vmem_limit = _vmem_limit_bytes()
    BB, TT = _choose_tiles(B, T, D, Kp, h_item, h_item,
                           batch_block, time_block_bytes, vmem_limit // 2)
    B_pad, T_pad = _round_up(B, BB), _round_up(T, TT)
    nb, nt = B_pad // BB, T_pad // TT

    # Zero-pad B and T (mask==0 padding is exact for the masked sums) and ship
    # the mask lane-dense over T as (B, 1, T) in the hidden-states dtype so the
    # in-kernel einsum is a single native-dtype MXU contraction.
    h_p = hidden_states
    m_p = mask.astype(h_dtype)
    if (B_pad, T_pad) != (B, T):
        h_p = jnp.pad(h_p, ((0, B_pad - B), (0, T_pad - T), (0, 0)))
        m_p = jnp.pad(m_p, ((0, B_pad - B), (0, T_pad - T)))
    m_p = m_p[:, None, :]                                    # (B_pad, 1, T_pad)

    # Lane-dense f32 projection params (zero-padded K -> Kp; padded lanes are
    # masked out of the softmax in-kernel) and a one-hot label matrix whose
    # padded batch rows are all-zero (so they contribute nothing).
    W_p = jnp.zeros((D, Kp), jnp.float32).at[:, :K].set(W.astype(jnp.float32))
    b_p = jnp.zeros((1, Kp), jnp.float32).at[:, :K].set(
        b.reshape(1, K).astype(jnp.float32))
    onehot = jax.nn.one_hot(labels, Kp, dtype=jnp.float32)
    if B_pad != B:
        onehot = jnp.pad(onehot, ((0, B_pad - B), (0, 0)))

    cost = pl.CostEstimate(
        flops=int(2 * B_pad * T_pad * D + B_pad * T_pad
                  + 2 * B_pad * D * Kp + 12 * B_pad * Kp),
        transcendentals=int(B_pad * Kp + 2 * B_pad),
        bytes_accessed=int(B_pad * T_pad * D * h_item + B_pad * T_pad * h_item
                           + (D + 1) * Kp * 4 + B_pad * Kp * 4 + B_pad * 128 * 4),
    )

    grid_spec = pltpu.PrefetchScalarGridSpec(
        num_scalar_prefetch=0,
        grid=(nb, nt),                       # time last => accumulator invariant
        in_specs=[
            pl.BlockSpec((BB, TT, D), lambda bi, ti: (bi, ti, 0)),   # hidden states
            pl.BlockSpec((BB, 1, TT), lambda bi, ti: (bi, 0, ti)),   # mask (lane-dense)
            pl.BlockSpec((D, Kp), lambda bi, ti: (0, 0)),            # W (resident)
            pl.BlockSpec((1, Kp), lambda bi, ti: (0, 0)),            # b (resident)
            pl.BlockSpec((BB, Kp), lambda bi, ti: (bi, 0)),          # one-hot labels
        ],
        out_specs=pl.BlockSpec((BB, 128), lambda bi, ti: (bi, 0)),
        scratch_shapes=[
            pltpu.VMEM((BB, 1, D), jnp.float32),   # masked-sum accumulator
            pltpu.VMEM((BB, 1), jnp.float32),      # mask-count accumulator
        ],
    )

    stats = pl.pallas_call(
        functools.partial(_disc_kernel, num_tasks=K),
        grid_spec=grid_spec,
        out_shape=jax.ShapeDtypeStruct((B_pad, 128), jnp.float32),
        compiler_params=pltpu.CompilerParams(
            dimension_semantics=("parallel", "arbitrary"),
            vmem_limit_bytes=int(vmem_limit),
        ),
        cost_estimate=cost,
    )(h_p, m_p, W_p, b_p, onehot)

    # Tiny wrapper-side reduction; all 1/B normalizations folded into one scale.
    totals = jnp.sum(stats[:B, :3], axis=0) * (1.0 / B)
    return totals[0], totals[1], totals[2]


# ---------------------------------------------------------------------------
# forward() glue: pad along time dim, concat along batch dim.
# ---------------------------------------------------------------------------
def pad_batched_tensors(tensors):
    max_t = max(t.shape[1] for t in tensors)
    padded = []
    for t in tensors:
        pad = [(0, 0)] * t.ndim
        pad[1] = (0, max_t - t.shape[1])
        padded.append(jnp.pad(t, pad))
    return jnp.concatenate(padded, axis=0)


# Pure-JAX reference for the correctness check.
def _ref_forward(h, m, W, b, labels):
    h = h.astype(jnp.float32)
    m = m.astype(jnp.float32)
    msum = m.sum(1, keepdims=True)
    reps = (h * m[:, :, None]).sum(1) / jnp.maximum(msum, 1e-6)
    z = jnp.maximum(reps @ W + b, 0.0)
    logp = jax.nn.log_softmax(z, axis=1)
    B, K = logp.shape
    d = -jnp.mean(logp[jnp.arange(B), labels])
    u = 1.0 / K
    g = jnp.sum(u * (jnp.log(u) - logp)) / B
    acc = jnp.mean((jnp.argmax(logp, axis=1) == labels).astype(jnp.float32))
    return d, g, acc


if __name__ == "__main__":
    key = jax.random.PRNGKey(0)
    k1, k2, k3, k4 = jax.random.split(key, 4)

    D, num_tasks = 128, 4

    # Two "tasks", each contributing a small batch of bf16 hidden states
    # (native generator dtype — NOT upcast before the kernel).
    h1 = jax.random.normal(k1, (16, 150, D), jnp.float32).astype(jnp.bfloat16)
    h2 = jax.random.normal(k2, (16, 200, D), jnp.float32).astype(jnp.bfloat16)
    # Masks include a leading BOS position that forward strips with [:, 1:].
    m1 = jnp.ones((16, 151), jnp.bfloat16)
    m2 = (jnp.ones((16, 201), jnp.bfloat16)
          .at[5, 120:].set(0).at[7, 60:].set(0).at[11, 180:].set(0))
    labels1 = jnp.arange(16, dtype=jnp.int32) % num_tasks
    labels2 = (jnp.arange(16, dtype=jnp.int32) + 1) % num_tasks

    # forward() glue: pad + concat, strip the first mask position.
    task_hidden_states = pad_batched_tensors([h1, h2])       # (32, 200, 128) bf16
    masks = pad_batched_tensors([m1, m2])[:, 1:]             # (32, 200)      bf16
    labels = jnp.concatenate([labels1, labels2], axis=0)     # (32,)          int32

    # Deterministic FeedForward parameters (input_dim=D, hidden_dims=num_tasks).
    W = 0.5 * jax.random.normal(k3, (D, num_tasks), jnp.float32)
    b = 0.2 * jax.random.normal(k4, (num_tasks,), jnp.float32)

    # Small time-tile target so the toy exercises a (2, 2) grid (BB=16, TT=128);
    # production shapes use the 2 MiB default and much larger tiles.
    d_loss, g_loss, acc = task_discriminator_forward(
        task_hidden_states, masks, W, b, labels,
        time_block_bytes=64 * 1024)
    jax.block_until_ready((d_loss, g_loss, acc))

    d_ref, g_ref, a_ref = _ref_forward(task_hidden_states, masks, W, b, labels)
    np.testing.assert_allclose(np.asarray(d_loss), np.asarray(d_ref), rtol=2e-4, atol=2e-5)
    np.testing.assert_allclose(np.asarray(g_loss), np.asarray(g_ref), rtol=2e-4, atol=2e-5)
    np.testing.assert_allclose(np.asarray(acc), np.asarray(a_ref), rtol=1e-5, atol=1e-6)

    print("KERNEL_OK")
</pallas_src>

<mosaic_0001>
module attributes {stable_mosaic.version = 11 : i64} {
  func.func @_disc_kernel(%arg0: i32, %arg1: i32, %arg2: memref<16x128x128xbf16, #tpu.memory_space<vmem>>, %arg3: memref<16x1x128xbf16, #tpu.memory_space<vmem>>, %arg4: memref<128x128xf32, #tpu.memory_space<vmem>>, %arg5: memref<1x128xf32, #tpu.memory_space<vmem>>, %arg6: memref<16x128xf32, #tpu.memory_space<vmem>>, %arg7: memref<16x128xf32, #tpu.memory_space<vmem>>, %arg8: memref<16x1x128xf32, #tpu.memory_space<vmem>>, %arg9: memref<16x1xf32, #tpu.memory_space<vmem>>) attributes {dimension_semantics = [#tpu.dimension_semantics<parallel>, #tpu.dimension_semantics<arbitrary>], iteration_bounds = array<i64: 2, 2>, scalar_prefetch = 0 : i64, scratch_operands = 2 : i64, tpu.core_type = #tpu.core_type<tc>, window_params = [{transform_indices = @transform_0, window_bounds = array<i64: 16, 128, 128>}, {transform_indices = @transform_1, window_bounds = array<i64: 16, 1, 128>}, {pipeline_mode = #tpu.pipeline_mode<synchronous>, transform_indices = @transform_2, window_bounds = array<i64: 128, 128>}, {pipeline_mode = #tpu.pipeline_mode<synchronous>, transform_indices = @transform_3, window_bounds = array<i64: 1, 128>}, {transform_indices = @transform_4, window_bounds = array<i64: 16, 128>}, {transform_indices = @transform_5, window_bounds = array<i64: 16, 128>}]} {
    %c0_i32 = arith.constant 0 : i32
    %0 = arith.cmpi eq, %arg1, %c0_i32 : i32
    %1 = arith.extui %0 : i1 to i32
    %c0_i32_0 = arith.constant 0 : i32
    %2 = arith.cmpi ne, %1, %c0_i32_0 : i32
    scf.if %2 {
      %cst_18 = arith.constant 0.000000e+00 : f32
      %17 = vector.broadcast %cst_18 : f32 to vector<16x1x128xf32>
      %c0_19 = arith.constant 0 : index
      %c0_20 = arith.constant 0 : index
      %c0_21 = arith.constant 0 : index
      %18 = vector.load %arg8[%c0_19, %c0_20, %c0_21] : memref<16x1x128xf32, #tpu.memory_space<vmem>>, vector<16x1x128xf32>
      tpu.vector_store %arg8[%c0_19, %c0_20, %c0_21], %17 {strides = array<i32>} : memref<16x1x128xf32, #tpu.memory_space<vmem>>, vector<16x1x128xf32>,
      %cst_22 = arith.constant 0.000000e+00 : f32
      %19 = vector.broadcast %cst_22 : f32 to vector<16x1xf32>
      %c0_23 = arith.constant 0 : index
      %c0_24 = arith.constant 0 : index
      %20 = vector.load %arg9[%c0_23, %c0_24] : memref<16x1xf32, #tpu.memory_space<vmem>>, vector<16x1xf32>
      tpu.vector_store %arg9[%c0_23, %c0_24], %19 {strides = array<i32>} : memref<16x1xf32, #tpu.memory_space<vmem>>, vector<16x1xf32>,
    } else {
    }
    %c0 = arith.constant 0 : index
    %c0_1 = arith.constant 0 : index
    %c0_2 = arith.constant 0 : index
    %3 = vector.load %arg2[%c0, %c0_1, %c0_2] : memref<16x128x128xbf16, #tpu.memory_space<vmem>>, vector<16x128x128xbf16>
    %c0_3 = arith.constant 0 : index
    %c0_4 = arith.constant 0 : index
    %c0_5 = arith.constant 0 : index
    %4 = vector.load %arg3[%c0_3, %c0_4, %c0_5] : memref<16x1x128xbf16, #tpu.memory_space<vmem>>, vector<16x1x128xbf16>
    %c0_6 = arith.constant 0 : index
    %c0_7 = arith.constant 0 : index
    %c0_8 = arith.constant 0 : index
    %5 = vector.load %arg8[%c0_6, %c0_7, %c0_8] : memref<16x1x128xf32, #tpu.memory_space<vmem>>, vector<16x1x128xf32>
    "tpu.trace_start"() <{level = 10 : i32, message = "bqt,btd->bqd"}> : () -> ()
    %cst = arith.constant dense<0.000000e+00> : vector<16x1x128xf32>
    %6 = tpu.matmul %4, %3, %cst {dimension_numbers = #tpu.dot_dimension_numbers<[2], [1], [1], [2], [0, 0, 0, 1, 1, 2], [0], [0]>} : vector<16x1x128xbf16>, vector<16x128x128xbf16>, vector<16x1x128xf32> -> vector<16x1x128xf32>
    "tpu.trace_stop"() : () -> ()
    %7 = arith.addf %5, %6 : vector<16x1x128xf32>
    %c0_9 = arith.constant 0 : index
    %c0_10 = arith.constant 0 : index
    %c0_11 = arith.constant 0 : index
    %8 = vector.load %arg8[%c0_9, %c0_10, %c0_11] : memref<16x1x128xf32, #tpu.memory_space<vmem>>, vector<16x1x128xf32>
    tpu.vector_store %arg8[%c0_9, %c0_10, %c0_11], %7 {strides = array<i32>} : memref<16x1x128xf32, #tpu.memory_space<vmem>>, vector<16x1x128xf32>,
    %c0_12 = arith.constant 0 : index
    %c0_13 = arith.constant 0 : index
    %9 = vector.load %arg9[%c0_12, %c0_13] : memref<16x1xf32, #tpu.memory_space<vmem>>, vector<16x1xf32>
    %10 = arith.extf %4 : vector<16x1x128xbf16> to vector<16x1x128xf32>
    %cst_14 = arith.constant dense<0.000000e+00> : vector<16x1xf32>
    %11 = vector.multi_reduction <add>, %10, %cst_14 [2] : vector<16x1x128xf32> to vector<16x1xf32>
    %12 = arith.addf %9, %11 : vector<16x1xf32>
    %c0_15 = arith.constant 0 : index
    %c0_16 = arith.constant 0 : index
    %13 = vector.load %arg9[%c0_15, %c0_16] : memref<16x1xf32, #tpu.memory_space<vmem>>, vector<16x1xf32>
    tpu.vector_store %arg9[%c0_15, %c0_16], %12 {strides = array<i32>} : memref<16x1xf32, #tpu.memory_space<vmem>>, vector<16x1xf32>,
    %c1_i32 = arith.constant 1 : i32
    %14 = arith.cmpi eq, %arg1, %c1_i32 : i32
    %15 = arith.extui %14 : i1 to i32
    %c0_i32_17 = arith.constant 0 : i32
    %16 = arith.cmpi ne, %15, %c0_i32_17 : i32
    scf.if %16 {
      %c0_18 = arith.constant 0 : index
      %c0_19 = arith.constant 0 : index
      %17 = vector.load %arg9[%c0_18, %c0_19] : memref<16x1xf32, #tpu.memory_space<vmem>>, vector<16x1xf32>
      %cst_20 = arith.constant 9.99999997E-7 : f32
      %18 = vector.broadcast %cst_20 : f32 to vector<16x1xf32>
      %19 = arith.maximumf %17, %18 : vector<16x1xf32>
      %20 = tpu.reciprocal %19 : vector<16x1xf32> -> vector<16x1xf32>
      %c0_21 = arith.constant 0 : index
      %c0_22 = arith.constant 0 : index
      %c0_23 = arith.constant 0 : index
      %21 = vector.load %arg8[%c0_21, %c0_22, %c0_23] : memref<16x1x128xf32, #tpu.memory_space<vmem>>, vector<16x1x128xf32>
      %22 = vector.shape_cast %21 : vector<16x1x128xf32> to vector<16x128xf32>
      %23 = vector.broadcast %20 : vector<16x1xf32> to vector<16x128xf32>
      %24 = arith.mulf %22, %23 : vector<16x128xf32>
      %c0_24 = arith.constant 0 : index
      %c0_25 = arith.constant 0 : index
      %25 = vector.load %arg4[%c0_24, %c0_25] : memref<128x128xf32, #tpu.memory_space<vmem>>, vector<128x128xf32>
      %cst_26 = arith.constant dense<0.000000e+00> : vector<16x128xf32>
      %26 = tpu.matmul %24, %25, %cst_26 {dimension_numbers = #tpu.dot_dimension_numbers<[1], [0], [0], [1], [0, 0, 1, 1], [], []>} : vector<16x128xf32>, vector<128x128xf32>, vector<16x128xf32> -> vector<16x128xf32>
      %c0_27 = arith.constant 0 : index
      %c0_28 = arith.constant 0 : index
      %27 = vector.load %arg5[%c0_27, %c0_28] : memref<1x128xf32, #tpu.memory_space<vmem>>, vector<1x128xf32>
      %28 = vector.broadcast %27 : vector<1x128xf32> to vector<16x128xf32>
      %29 = arith.addf %26, %28 : vector<16x128xf32>
      %cst_29 = arith.constant 0.000000e+00 : f32
      %30 = vector.broadcast %cst_29 : f32 to vector<16x128xf32>
      %31 = arith.maximumf %29, %30 : vector<16x128xf32>
      %32 = tpu.iota {dimensions = array<i32: 1>} : vector<16x128xi32>
      %c4_i32 = arith.constant 4 : i32
      %33 = vector.broadcast %c4_i32 : i32 to vector<16x128xi32>
      %34 = arith.cmpi slt, %32, %33 : vector<16x128xi32>
      %cst_30 = arith.constant -1.000000e+30 : f32
      %35 = vector.broadcast %cst_30 : f32 to vector<16x128xf32>
      %36 = arith.select %34, %31, %35 : vector<16x128xi1>, vector<16x128xf32>
      %cst_31 = arith.constant dense<0xFF800000> : vector<16xf32>
      %37 = vector.multi_reduction <maximumf>, %36, %cst_31 [1] : vector<16x128xf32> to vector<16xf32>
      %38 = vector.shape_cast %37 : vector<16xf32> to vector<16x1xf32>
      %39 = vector.broadcast %38 : vector<16x1xf32> to vector<16x128xf32>
      %40 = arith.subf %36, %39 : vector<16x128xf32>
      %41 = math.exp %40 : vector<16x128xf32>
      %cst_32 = arith.constant 0.000000e+00 : f32
      %42 = vector.broadcast %cst_32 : f32 to vector<16x128xf32>
      %43 = arith.select %34, %41, %42 : vector<16x128xi1>, vector<16x128xf32>
      %cst_33 = arith.constant dense<0.000000e+00> : vector<16xf32>
      %44 = vector.multi_reduction <add>, %43, %cst_33 [1] : vector<16x128xf32> to vector<16xf32>
      %45 = vector.shape_cast %44 : vector<16xf32> to vector<16x1xf32>
      %46 = math.log %45 : vector<16x1xf32>
      %47 = arith.addf %38, %46 : vector<16x1xf32>
      %48 = vector.broadcast %47 : vector<16x1xf32> to vector<16x128xf32>
      %49 = arith.subf %36, %48 : vector<16x128xf32>
      %c0_34 = arith.constant 0 : index
      %c0_35 = arith.constant 0 : index
      %50 = vector.load %arg6[%c0_34, %c0_35] : memref<16x128xf32, #tpu.memory_space<vmem>>, vector<16x128xf32>
      %cst_36 = arith.constant dense<0.000000e+00> : vector<16xf32>
      %51 = vector.multi_reduction <add>, %50, %cst_36 [1] : vector<16x128xf32> to vector<16xf32>
      %52 = vector.shape_cast %51 : vector<16xf32> to vector<16x1xf32>
      %53 = arith.mulf %50, %49 : vector<16x128xf32>
      %cst_37 = arith.constant dense<0.000000e+00> : vector<16xf32>
      %54 = vector.multi_reduction <add>, %53, %cst_37 [1] : vector<16x128xf32> to vector<16xf32>
      %55 = vector.shape_cast %54 : vector<16xf32> to vector<16x1xf32>
      %cst_38 = arith.constant 0.000000e+00 : f32
      %56 = vector.broadcast %cst_38 : f32 to vector<16x1xf32>
      %57 = arith.subf %56, %55 : vector<16x1xf32>
      %cst_39 = arith.constant -1.38629436 : f32
      %58 = vector.broadcast %cst_39 : f32 to vector<16x128xf32>
      %59 = arith.subf %58, %49 : vector<16x128xf32>
      %cst_40 = arith.constant 2.500000e-01 : f32
      %60 = vector.broadcast %cst_40 : f32 to vector<16x128xf32>
      %61 = arith.mulf %60, %59 : vector<16x128xf32>
      %cst_41 = arith.constant 0.000000e+00 : f32
      %62 = vector.broadcast %cst_41 : f32 to vector<16x128xf32>
      %63 = arith.select %34, %61, %62 : vector<16x128xi1>, vector<16x128xf32>
      %cst_42 = arith.constant dense<0.000000e+00> : vector<16xf32>
      %64 = vector.multi_reduction <add>, %63, %cst_42 [1] : vector<16x128xf32> to vector<16xf32>
      %65 = vector.shape_cast %64 : vector<16xf32> to vector<16x1xf32>
      %66 = arith.mulf %52, %65 : vector<16x1xf32>
      %cst_43 = arith.constant dense<0xFF800000> : vector<16xf32>
      %67 = vector.multi_reduction <maximumf>, %49, %cst_43 [1] : vector<16x128xf32> to vector<16xf32>
      %68 = vector.shape_cast %67 : vector<16xf32> to vector<16x1xf32>
      %69 = vector.broadcast %68 : vector<16x1xf32> to vector<16x128xf32>
      %70 = arith.cmpf oge, %49, %69 : vector<16x128xf32>
      %c128_i32 = arith.constant 128 : i32
      %71 = vector.broadcast %c128_i32 : i32 to vector<16x128xi32>
      %72 = arith.select %70, %32, %71 : vector<16x128xi1>, vector<16x128xi32>
      %cst_44 = arith.constant dense<2147483647> : vector<16xi32>
      %73 = vector.multi_reduction <minsi>, %72, %cst_44 [1] : vector<16x128xi32> to vector<16xi32>
      %74 = vector.shape_cast %73 : vector<16xi32> to vector<16x1xi32>
      %75 = arith.sitofp %32 : vector<16x128xi32> to vector<16x128xf32>
      %76 = arith.mulf %50, %75 : vector<16x128xf32>
      %cst_45 = arith.constant dense<0.000000e+00> : vector<16xf32>
      %77 = vector.multi_reduction <add>, %76, %cst_45 [1] : vector<16x128xf32> to vector<16xf32>
      %78 = vector.shape_cast %77 : vector<16xf32> to vector<16x1xf32>
      %79 = arith.sitofp %74 : vector<16x1xi32> to vector<16x1xf32>
      %80 = arith.cmpf oeq, %79, %78 : vector<16x1xf32>
      %81 = arith.extui %80 : vector<16x1xi1> to vector<16x1xi32>
      %82 = arith.sitofp %81 : vector<16x1xi32> to vector<16x1xf32>
      %83 = arith.mulf %52, %82 : vector<16x1xf32>
      %84 = tpu.iota {dimensions = array<i32: 1>} : vector<16x128xi32>
      %c0_i32_46 = arith.constant 0 : i32
      %85 = vector.broadcast %c0_i32_46 : i32 to vector<16x128xi32>
      %86 = arith.cmpi eq, %84, %85 : vector<16x128xi32>
      %cst_47 = arith.constant 0.000000e+00 : f32
      %87 = vector.shape_cast %57 : vector<16x1xf32> to vector<16x1xf32>
      %88 = vector.broadcast %87 : vector<16x1xf32> to vector<16x128xf32>
      %89 = vector.broadcast %cst_47 : f32 to vector<16x128xf32>
      %90 = arith.select %86, %88, %89 : vector<16x128xi1>, vector<16x128xf32>
      %c1_i32_48 = arith.constant 1 : i32
      %91 = vector.broadcast %c1_i32_48 : i32 to vector<16x128xi32>
      %92 = arith.cmpi eq, %84, %91 : vector<16x128xi32>
      %cst_49 = arith.constant 0.000000e+00 : f32
      %93 = vector.shape_cast %66 : vector<16x1xf32> to vector<16x1xf32>
      %94 = vector.broadcast %93 : vector<16x1xf32> to vector<16x128xf32>
      %95 = vector.broadcast %cst_49 : f32 to vector<16x128xf32>
      %96 = arith.select %92, %94, %95 : vector<16x128xi1>, vector<16x128xf32>
      %97 = arith.addf %90, %96 : vector<16x128xf32>
      %c2_i32 = arith.constant 2 : i32
      %98 = vector.broadcast %c2_i32 : i32 to vector<16x128xi32>
      %99 = arith.cmpi eq, %84, %98 : vector<16x128xi32>
      %cst_50 = arith.constant 0.000000e+00 : f32
      %100 = vector.shape_cast %83 : vector<16x1xf32> to vector<16x1xf32>
      %101 = vector.broadcast %100 : vector<16x1xf32> to vector<16x128xf32>
      %102 = vector.broadcast %cst_50 : f32 to vector<16x128xf32>
      %103 = arith.select %99, %101, %102 : vector<16x128xi1>, vector<16x128xf32>
      %104 = arith.addf %97, %103 : vector<16x128xf32>
      %c0_51 = arith.constant 0 : index
      %c0_52 = arith.constant 0 : index
      %105 = vector.load %arg7[%c0_51, %c0_52] : memref<16x128xf32, #tpu.memory_space<vmem>>, vector<16x128xf32>
      tpu.vector_store %arg7[%c0_51, %c0_52], %104 {strides = array<i32>} : memref<16x128xf32, #tpu.memory_space<vmem>>, vector<16x128xf32>,
    } else {
    }
    return
  }
  func.func @transform_0(%arg0: i32, %arg1: i32) -> (i32, i32, i32) {
    %c0_i32 = arith.constant 0 : i32
    %c0_i32_0 = arith.constant 0 : i32
    return %arg0, %arg1, %c0_i32 : i32, i32, i32
  }
  func.func @transform_1(%arg0: i32, %arg1: i32) -> (i32, i32, i32) {
    %c0_i32 = arith.constant 0 : i32
    %c0_i32_0 = arith.constant 0 : i32
    return %arg0, %c0_i32, %arg1 : i32, i32, i32
  }
  func.func @transform_2(%arg0: i32, %arg1: i32) -> (i32, i32) {
    %c0_i32 = arith.constant 0 : i32
    %c0_i32_0 = arith.constant 0 : i32
    %c0_i32_1 = arith.constant 0 : i32
    return %c0_i32, %c0_i32_0 : i32, i32
  }
  func.func @transform_3(%arg0: i32, %arg1: i32) -> (i32, i32) {
    %c0_i32 = arith.constant 0 : i32
    %c0_i32_0 = arith.constant 0 : i32
    %c0_i32_1 = arith.constant 0 : i32
    return %c0_i32, %c0_i32_0 : i32, i32
  }
  func.func @transform_4(%arg0: i32, %arg1: i32) -> (i32, i32) {
    %c0_i32 = arith.constant 0 : i32
    %c0_i32_0 = arith.constant 0 : i32
    return %arg0, %c0_i32 : i32, i32
  }
  func.func @transform_5(%arg0: i32, %arg1: i32) -> (i32, i32) {
    %c0_i32 = arith.constant 0 : i32
    %c0_i32_0 = arith.constant 0 : i32
    return %arg0, %c0_i32 : i32, i32
  }
}

</mosaic_0001>

<bundles_post_ra>
// kernel: tpu_custom_call.1
= control target key start
LH: loop header
LB: loop body
LE: loop exit
PB: predicated region body
PF: predicated region fallthrough
CT: control target
= control target key end

     0   :  { %s5078_s0 = inlined_call_operand.hbm [shape: bf16[32,256,128], index: 0, kind: input, shape index: {}]   ;;  %s5079_s1 = inlined_call_operand.vmem [shape: bf16[32,1,256], index: 1, kind: input, shape index: {}]   ;;  %s5080_s2 = inlined_call_operand.hbm [shape: f32[128,128], index: 2, kind: input, shape index: {}]   ;;  %s5081_s3 = inlined_call_operand.hbm [shape: f32[1,128], index: 3, kind: input, shape index: {}]   ;;  %s5082_s4 = inlined_call_operand.hbm [shape: f32[32,128], index: 4, kind: input, shape index: {}]   ;;  %s5083_s5 = inlined_call_operand.hbm [shape: f32[32,128], index: 5, kind: output, shape index: {}]  }
   0x1   :  { %5101 = sst [smem:[#allocation31_spill]] %s5078_s0 }
   0x2   :  { %5102 = sst [smem:[#allocation32_spill]] %s5083_s5 }
   0x3   :  { %10 = vsyncpa [#allocation5], 0 }
   0x4   :  { %12 = vsyncpa [#allocation5 + $0x1], 0 }
   0x5   :  { %13 = vsyncpa [#allocation9], 0 }
   0x6   :  { %14 = vsyncpa [#allocation12], 0 }
   0x7   :  { %16 = vsyncpa [#allocation12 + $0x1], 0 }
   0x8   :  { %17 = vsyncpa [#allocation6], 0 }
   0x9   :  { %19 = vsyncpa [#allocation6 + $0x1], 0  ;;  %s4261_s18 = smov 0   ;;  %s4263_s19 = smov 0  }
   0xa   :  { %s4265_s20 = smov 0   ;;  %s4267_s21 = smov 0  }
   0xb   :  { %s4269_s22 = smov 0   ;;  %s4271_s23 = smov 0  }
   0xc   :  { %s4273_s24 = smov 0   ;;  %s4275_s25 = smov 0  }
   0xd   :  { %s4277_s26 = smov 0   ;;  %s4279_s27 = smov 0  }
   0xe   :  { %s4281_s28 = smov 0  }
   0xf LB: > { %5103 = sst [smem:[#allocation21_spill]] %s4167_s18  ;;  %s2990_s29 = sadd.s32 4294967295, %s4207_s28   ;;  %s4207_s28 = sphi %s4281_s28, %s25_s28   ;;  %s4203_s27 = sphi %s4279_s27, %s5153_s27   ;;  %s4199_s26 = sphi %s4277_s26, %s5152_s26   ;;  %s4195_s25 = sphi %s4275_s25, %s5151_s25   ;;  %s4191_s24 = sphi %s4273_s24, %s5150_s24   ;;  %s4187_s23 = sphi %s4271_s23, %s5149_s23   ;;  %s4183_s22 = sphi %s4269_s22, %s5148_s22   ;;  %s4179_s21 = sphi %s4267_s21, %s5147_s21   ;;  %s4175_s20 = sphi %s4265_s20, %s5146_s20   ;;  %s4171_s19 = sphi %s4263_s19, %s5145_s19   ;;  %s4167_s18 = sphi %s4261_s18, %s5144_s18  }
  0x10   : > { %5104 = sst [smem:[#allocation22_spill]] %s4191_s24  ;;  %s2991_s30 = sadd.s32 4294967294, %s4207_s28  }
  0x11   : > { %5105 = sst [smem:[#allocation23_spill]] %s4195_s25  ;;  %s34_s6 = sadd.s32 1, %s4199_s26 }
  0x12   : > { %s37_s7 = sadd.s32 1, %s4203_s27  ;;  %p35_p0 = scmp.ge.s32.totalorder %s34_s6, 2 }
  0x13   : > { %s46_s8 = sadd.s32 1, %s4187_s23  ;;  %p53_p1 = scmp.ne.s32.totalorder %s4187_s23, %s4183_s22 }
  0x14   : > { %p54_p2 = scmp.eq.s32.totalorder %s4207_s28, 0  ;;  %s5155_s6 = smov (%p35_p0, %s34_s6), 0 }
  0x15   : > { %5106 = sst [smem:[#allocation24_spill]] %s5155_s6  ;;  %s5157_s7 = smov (!%p35_p0, %s37_s7), %s4203_s27 }
  0x16   : > { %s42_s9 = ssub.s32 %s4199_s26, %s5155_s6  ;;  %p4329_p3 = por %p54_p2, %p53_p1 }
  0x17   : > { %p39_p4 = scmp.ge.s32.totalorder %s5157_s7, 2  ;;  %p59_p5 = scmp.ne.s32.totalorder %s4183_s22, %s4179_s21 }
  0x18   : > { %s5107_s10 = scalar_select %p4329_p3, 1, 0 }
  0x19   : > { %p4334_p6 = scmp.eq.s32.totalorder %s2990_s29, 0  ;;  %s142_s12 = sadd.s32 1, %s4175_s20 }
  0x1a   : > { %s5159_s7 = smov (%p39_p4, %s5157_s7), 0  ;;  %p149_p8 = scmp.ne.s32.totalorder %s4175_s20, %s4171_s19 }
  0x1b   : > { %s5108_s11 = scalar_select %p4334_p6, 1, 0 }
  0x1c   : > { %5109 = sst [smem:[#allocation25_spill]] %s5159_s7  ;;  %p4343_p7 = por %p4334_p6, %p59_p5 }
  0x1d   : > { %s41_s14 = ssub.s32 %s4203_s27, %s5159_s7  ;;  %p155_p9 = scmp.ne.s32.totalorder %s4171_s19, %s4167_s18 }
  0x1e   : > { %s5110_s13 = scalar_select %p4343_p7, 1, 0 }
  0x1f   : > { %s43_s15 = sor.u32 %s42_s9, %s41_s14  ;;  %p140_p10 = scmp.eq.s32.totalorder %s41_s14, 0 }
  0x20   : > { %p44_p11 = scmp.eq.s32.totalorder %s43_s15, 0  ;;  %p4358_p12 = por %p149_p8, %p54_p2 }
  0x21   : > { %s4363_s17 = scalar_select %p140_p10, %s4175_s20, %s142_s12  }
  0x22   : > { %s5111_s16 = scalar_select %p4358_p12, 1, 0 }
  0x23   : > { %5112 = sst [smem:[#allocation26_spill]] %s4363_s17  ;;  %p4373_p13 = por %p155_p9, %p4334_p6 }
  0x24   : > { %s4366_s21 = scalar_select %p44_p11, %s4187_s23, %s46_s8  }
  0x25   : > { %s5114_s6 = scalar_select %p4373_p13, 1, 0 }
  0x26   : > { %5113 = sst [smem:[#allocation27_spill]] %s4366_s21  ;;  %p179_p0 = scmp.eq.s32.totalorder %s2990_s29, 3 }
  0x27   : > { %5115 = sst [smem:[#allocation28_spill]] %s5114_s6  ;;  %p185_p1 = scmp.eq.s32.totalorder %s2991_s30, 3 }
  0x28   : > { %p2992_p4 = scmp.ge.s32.totalorder %s4207_s28, 1  ;;  %p4381_p5 = por %p179_p0, %p149_p8 }
  0x29   : > { %p192_p2 = scmp.lt.s32.totalorder %s4207_s28, 5  ;;  %p4389_p10 = por %p185_p1, %p155_p9 }
  0x2a   : > { %s5116_s9 = scalar_select %p4381_p5, 1, 0 }
  0x2b   : > { %s5118_s12 = scalar_select %p4389_p10, 1, 0 }
  0x2c   : > { %5117 = sst [smem:[#allocation29_spill]] %s5116_s9  ;;  %p4393_p11 = pnand %p2992_p4, %p192_p2 }
  0x2d   : > { %5119 = sst [smem:[#allocation30_spill]] %s5118_s12  ;;  %s4209_s14 = smov [#allocation8]  }
  0x2e   : > { %s5120_s8 = scalar_select %p4393_p11, 1, 0 }
  0x2f   : > { %s204_s29 = sshll.u32 %s4209_s14, 4  ;;  %p3728_p13 = pneg %p4393_p11  ;;  %s205_s29 = int_to_ptr.vmem [resolvable:$true] %s204_s29 }
  0x30   : > { %s4210_s15 = smov [#allocation10]   ;;  %s3993_s12 = scalar_lea.hbm %s5080_s2, 2048 }
  0x31   : > { %p4401_p8 = pnand %p3728_p13, %p4334_p6  ;;  %s218_s7 = sshll.u32 %s4210_s15, 4  ;;  %s4405_s7 = int_to_ptr.vmem [resolvable:$true] %s218_s7 }
  0x32   : > { %p3994_p9 = scmp.ne.s32.totalorder %s5080_s2, %s3993_s12  ;;  %p4000_p4 = scmp.lt.u32.totalorder %s3993_s12, %s5080_s2 }
  0x33   : > { %p3995_p0 = pneg %p4401_p8 }
  0x35   : > { %p3996_p13 = pnand %p3995_p0, %p3994_p9 }
  0x37   : > { %p3997_p1 = pneg %p3996_p13 }
  0x39   : > { %p4002_p2 = pnand %p4000_p4, %p3997_p1 }
  0x3b   : > { %4005 = shalt.err (!%p4002_p2)
}
  0x3c   : > { %s4006_s15 = scalar_lea.vmem %s205_s29, 2048  ;;  %p4014_p7 = scmp.lt.s32.totalorder %s205_s29, %s205_s29 }
  0x3d   : > { %p4007_p10 = scmp.ne.s32.totalorder %s205_s29, %s4006_s15  ;;  %p4015_p11 = scmp.lt.s32.totalorder %s4006_s15, %s4006_s15 }
  0x3f   : > { %p4009_p5 = pnand %p4007_p10, %p3995_p0  ;;  %p4016_p12 = por %p4015_p11, %p4014_p7 }
  0x41   : > { %p4010_p6 = pneg %p4009_p5 }
  0x43   : > { %p4017_p3 = pnand %p4016_p12, %p4010_p6 }
  0x45   : > { %4020 = shalt.err (!%p4017_p3)
}
  0x46   : > { %s4211_s18 = smov 128   ;;  %s4212_s17 = smov 8  }
  0x47   : > { %3731 = dma.hbm_to_vmem [thread:$0]  (!%p4401_p8), %s5080_s2, 2048, %s205_s29, [#allocation9], %s4211_s18, %s4211_s18, %s4212_s17  }
  0x48   : > { %s4021_s14 = scalar_lea.hbm %s5081_s3, 16 }
  0x49   : > { %p4022_p5 = scmp.ne.s32.totalorder %s5081_s3, %s4021_s14  ;;  %p4028_p7 = scmp.lt.u32.totalorder %s4021_s14, %s5081_s3 }
  0x4b   : > { %p4024_p3 = pnand %p4022_p5, %p3995_p0 }
  0x4d   : > { %p4025_p6 = pneg %p4024_p3 }
  0x4f   : > { %p4030_p12 = pnand %p4028_p7, %p4025_p6 }
  0x51   : > { %4033 = shalt.err (!%p4030_p12)
}
  0x52   : > { %s4034_s29 = scalar_lea.vmem %s4405_s7, 16  ;;  %s4041_s24 = scalar_lea.vmem %s4405_s7, 32 }
  0x53   : > { %p4035_p10 = scmp.ne.s32.totalorder %s4405_s7, %s4034_s29  ;;  %p4042_p13 = scmp.lt.s32.totalorder %s4405_s7, %s4405_s7 }
  0x54   : > { %p4043_p1 = scmp.lt.s32.totalorder %s4041_s24, %s4034_s29 }
  0x55   : > { %p4037_p11 = pnand %p4035_p10, %p3995_p0 }
  0x56   : > { %p4044_p4 = por %p4043_p1, %p4042_p13 }
  0x57   : > { %p4038_p9 = pneg %p4037_p11 }
  0x59   : > { %p4045_p2 = pnand %p4044_p4, %p4038_p9 }
  0x5b   : > { %4048 = shalt.err (!%p4045_p2)
}
  0x5c   : > { %3734 = dma.hbm_to_vmem [thread:$0]  (!%p4401_p8), %s5081_s3, 16, %s4405_s7, [#allocation9]  }
  0x5d   : > { %p2995_p5 = scmp.ge.s32.totalorder %s4207_s28, 4 }
  0x5f   : > { %225 = sbr.rel (%p2995_p5) target bundleno = 159 (0x9f), region = 24 }
  0x66   : > { %s4457_s18 = sand.u32 1, %s4187_s23   ;;  %s2998_s17 = sshll.u32 %s4199_s26, 4 }
  0x67   : > { %s2996_s30 = sshll.u32 %s4457_s18, 10  ;;  %s3154_s5 = sshll.u32 %s4203_s27, 9 }
  0x68   : > { %s240_s21 = sadd.s32 %s3154_s5, %s2998_s17  ;;  %s233_s7 = scalar_lea.vmem [#allocation4], %s2996_s30 }
  0x69   : > { %s255_s9 = sshll.u32 %s233_s7, 4  ;;  %s3000_s12 = sshll.u32 %s240_s21, 6  ;;  %s256_s9 = int_to_ptr.vmem [resolvable:$true] %s255_s9 }
  0x6a   : > { %p5122_p8 = scmp.ne.s32.totalorder %s5107_s10, 0  ;;  %s4213_s15 = smov 2048  }
  0x6b   : > { %s4214_s24 = smov 1024   ;;  %s4215_s25 = smov 16  }
  0x6c   : > { %s3711_s14 = scalar_select %p5122_p8, [#allocation0], [#allocation16] }
  0x6d   : > { %3712 = sst [smem:[#allocation15]] (%p5122_p8), %s4213_s15  ;;  %s4216_s6 = smov 64  }
  0x6e   : > { %s247_s29 = sld [smem:[%s3711_s14]]   ;;  %s4217_s21 = smov 4  }
  0x6f   : > { %3713 = sst [smem:[#allocation15 + $0x1]] (%p5122_p8), %s4214_s24  ;;  %s5123_s0 = sld [smem:[#allocation31_spill]] }
  0x70   : > { %3714 = sst [smem:[#allocation15 + $0x2]] (%p5122_p8), %s4215_s25  ;;  %s230_s15 = scalar_lea.sflag [#allocation5], %s4457_s18 }
  0x71   : > { %3715 = sst [smem:[#allocation15 + $0x3]] (%p5122_p8), %s4216_s6  ;;  %s4218_s24 = smov [#allocation14]  }
  0x72   : > { %3716 = sst [smem:[#allocation15 + $0x4]] (%p5122_p8), %s4216_s6  ;;  %277 = sbr.rel (!%p5122_p8) target bundleno = 132 (0x84), region = 32 }
  0x73   : > { %3717 = sst [smem:[#allocation15 + $0x5]] (%p5122_p8), %s4217_s21  ;;  %s3003_s25 = sshll.u32 (%p5122_p8), %s4457_s18, 4 }
  0x74   : > { %s3001_s7 = sshll.u32 %s247_s29, 26  ;;  %s3155_s17 = sshll.u32 (%p5122_p8), %s4203_s27, 5 }
  0x75   : > { %s242_s5 = scalar_lea.hbm %s5123_s0, %s3000_s12  ;;  %s3002_s14 = sadd.s32 134217728, %s3001_s7 }
  0x76   : > { %3718 = dma.general (%p5122_p8), %s242_s5, 16384, %s256_s9, %s230_s15, %s4218_s24, [#allocation15], %s3002_s14, 0  }
  0x77   : > { %s284_s12 = sadd.s32 (%p5122_p8), %s4199_s26, %s3155_s17  ;;  %s281_s10 = scalar_lea.vmem (%p5122_p8), [#allocation7], %s3003_s25 }
  0x78   : > { %s4490_s0 = scalar_lea.vmem (%p5122_p8), %s5079_s1, %s284_s12 }
  0x79   : > { %v301_v0 = vld [vmem:[%s4490_s0] sm:$0x1]  ;;  %v303_v1 = vld [vmem:[%s4490_s0 + $0x2] sm:$0x1]  ;;  %v305_v2 = vld [vmem:[%s4490_s0 + $0x4] sm:$0x1] }
  0x7a   : > { %302 = vst [vmem:[%s281_s10] sm:$0x1] %v301_v0  ;;  %304 = vst [vmem:[%s281_s10 + $0x1] sm:$0x1] %v303_v1  ;;  %v307_v3 = vld [vmem:[%s4490_s0 + $0x6] sm:$0x1] }
  0x7b   : > { %306 = vst [vmem:[%s281_s10 + $0x2] sm:$0x1] %v305_v2  ;;  %v309_v4 = vld [vmem:[%s4490_s0 + $0x8] sm:$0x1]  ;;  %v311_v5 = vld [vmem:[%s4490_s0 + $0xa] sm:$0x1] }
  0x7c   : > { %308 = vst [vmem:[%s281_s10 + $0x3] sm:$0x1] %v307_v3  ;;  %310 = vst [vmem:[%s281_s10 + $0x4] sm:$0x1] %v309_v4  ;;  %v313_v6 = vld [vmem:[%s4490_s0 + $0xc] sm:$0x1] }
  0x7d   : > { %312 = vst [vmem:[%s281_s10 + $0x5] sm:$0x1] %v311_v5  ;;  %v315_v7 = vld [vmem:[%s4490_s0 + $0xe] sm:$0x1]  ;;  %v317_v8 = vld [vmem:[%s4490_s0 + $0x10] sm:$0x1] }
  0x7e   : > { %314 = vst [vmem:[%s281_s10 + $0x6] sm:$0x1] %v313_v6  ;;  %316 = vst [vmem:[%s281_s10 + $0x7] sm:$0x1] %v315_v7  ;;  %v319_v9 = vld [vmem:[%s4490_s0 + $0x12] sm:$0x1] }
  0x7f   : > { %318 = vst [vmem:[%s281_s10 + $0x8] sm:$0x1] %v317_v8  ;;  %v321_v10 = vld [vmem:[%s4490_s0 + $0x14] sm:$0x1]  ;;  %v323_v11 = vld [vmem:[%s4490_s0 + $0x16] sm:$0x1] }
  0x80   : > { %320 = vst [vmem:[%s281_s10 + $0x9] sm:$0x1] %v319_v9  ;;  %322 = vst [vmem:[%s281_s10 + $0xa] sm:$0x1] %v321_v10  ;;  %v325_v12 = vld [vmem:[%s4490_s0 + $0x18] sm:$0x1] }
  0x81   : > { %324 = vst [vmem:[%s281_s10 + $0xb] sm:$0x1] %v323_v11  ;;  %v327_v13 = vld [vmem:[%s4490_s0 + $0x1a] sm:$0x1]  ;;  %v329_v14 = vld [vmem:[%s4490_s0 + $0x1c] sm:$0x1] }
  0x82   : > { %326 = vst [vmem:[%s281_s10 + $0xc] sm:$0x1] %v325_v12  ;;  %328 = vst [vmem:[%s281_s10 + $0xd] sm:$0x1] %v327_v13  ;;  %v331_v15 = vld [vmem:[%s4490_s0 + $0x1e] sm:$0x1] }
  0x83   : > { %330 = vst [vmem:[%s281_s10 + $0xe] sm:$0x1] %v329_v14  ;;  %332 = vst [vmem:[%s281_s10 + $0xf] sm:$0x1] %v331_v15 }
  0x84 PF: > { %s388_s18 = sand.u32 1, %s4175_s20   ;;  %s3156_s9 = sshll.u32 %s4203_s27, 8 }
  0x85   : > { %s3006_s29 = sshll.u32 %s388_s18, 4  ;;  %s4513_s7 = scalar_lea.hbm %s5082_s4, %s3156_s9 }
  0x86   : > { %s392_s14 = scalar_lea.vmem [#allocation11], %s3006_s29  ;;  %s4517_s0 = scalar_lea.sflag [#allocation12], %s388_s18 }
  0x87   : > { %s399_s15 = sshll.u32 %s392_s14, 4  ;;  %s4049_s24 = scalar_lea.hbm %s4513_s7, 256  ;;  %s4515_s15 = int_to_ptr.vmem [resolvable:$true] %s399_s15 }
  0x88   : > { %p4050_p0 = scmp.ne.s32.totalorder %s4513_s7, %s4049_s24  ;;  %p5124_p3 = scmp.ne.s32.totalorder %s5111_s16, 0 }
  0x89   : > { %s4053_s12 = scalar_lea.hbm %s5082_s4, 512  ;;  %p4054_p12 = scmp.lt.u32.totalorder %s4513_s7, %s5082_s4 }
  0x8a   : > { %p4051_p6 = pnand %p4050_p0, %p5124_p3  ;;  %p4055_p10 = scmp.lt.u32.totalorder %s4053_s12, %s4049_s24 }
  0x8b   : > { %p4057_p9 = scmp.lt.u32.totalorder %s4049_s24, %s4513_s7 }
  0x8c   : > { %p4052_p7 = pneg %p4051_p6  ;;  %p4056_p11 = por %p4055_p10, %p4054_p12 }
  0x8e   : > { %p4058_p13 = por %p4057_p9, %p4056_p11 }
  0x90   : > { %p4059_p1 = pnand %p4058_p13, %p4052_p7 }
  0x92   : > { %4062 = shalt.err (!%p4059_p1)
}
  0x93   : > { %s4063_s10 = scalar_lea.vmem %s4515_s15, 256  ;;  %s4219_s18 = smov [#allocation11]  }
  0x94   : > { %p4064_p4 = scmp.ne.s32.totalorder %s4515_s15, %s4063_s10  ;;  %s4067_s9 = sshll.u32 %s4219_s18, 4  ;;  %s4068_s9 = int_to_ptr.vmem [resolvable:$false] %s4067_s9 }
  0x95   : > { %s4069_s29 = scalar_lea.vmem %s4068_s9, 512  ;;  %p4070_p8 = scmp.lt.s32.totalorder %s4515_s15, %s4068_s9 }
  0x96   : > { %p4065_p2 = pnand %p4064_p4, %p5124_p3  ;;  %p4071_p0 = scmp.lt.s32.totalorder %s4069_s29, %s4063_s10 }
  0x98   : > { %p4066_p5 = pneg %p4065_p2  ;;  %p4072_p6 = por %p4071_p0, %p4070_p8 }
  0x9a   : > { %p4073_p12 = pnand %p4072_p6, %p4066_p5 }
  0x9c   : > { %4076 = shalt.err (!%p4073_p12)
}
  0x9d   : > { %s4220_s5 = smov 128   ;;  %s4221_s21 = smov 8  }
  0x9e   : > { %3719 = dma.hbm_to_vmem [thread:$0]  (%p5124_p3), %s4513_s7, 256, %s4515_s15, %s4517_s0, %s4220_s5, %s4220_s5, %s4221_s21  }
  0x9f PF: > { %p5125_p7 = scmp.ne.s32.totalorder %s5120_s8, 0 }
  0xa0   : > { %s413_s14 = sand.u32 (!%p5125_p7), 1, %s4183_s22   ;;  %p5126_p10 = scmp.ne.s32.totalorder (!%p5125_p7), %s5110_s13, 0 }
  0xa1   : > { %411 = sbr.rel (%p5125_p7) target bundleno = 1746 (0x6d2), region = 77  ;;  %s3010_s24 = sshll.u32 (!%p5125_p7), %s413_s14, 10 }
  0xa2   : > { %s414_s25 = scalar_lea.sflag (!%p5125_p7), [#allocation5], %s413_s14  ;;  %s4544_s17 = scalar_lea.vmem (!%p5125_p7), [#allocation4], %s3010_s24 }
  0xa8   : > { %4150 = dma.done.wait (%p5126_p10), %s414_s25, 16384  }
  0xa9   : > { %4152 = vsyncadd (%p5126_p10), %s414_s25, 4294950912  ;;  %s3011_s12 = sshll.u32 %s413_s14, 4  ;;  %p5127_p3 = scmp.ne.s32.totalorder %s5108_s11, 0 }
  0xaa   : > { %s4550_s16 = scalar_lea.vmem [#allocation7], %s3011_s12 }
  0xab   : > { %4154 = dma.done.wait (%p5127_p3), [#allocation9], 2064  }
  0xac   : > { %4156 = vsyncadd (%p5127_p3), [#allocation9], 4294965232  ;;  %s5128_s8 = sld [smem:[#allocation28_spill]]  ;;  %s4557_s7 = sand.u32 1, %s4171_s19  }
  0xad   : > { %s3014_s15 = sshll.u32 %s4557_s7, 4  ;;  %s438_s0 = scalar_lea.sflag [#allocation12], %s4557_s7 }
  0xae   : > { %s4561_s30 = scalar_lea.vmem [#allocation11], %s3014_s15 }
  0xb2   : > { %p5129_p11 = scmp.ne.s32.totalorder %s5128_s8, 0 }
  0xb4   : > { %4158 = dma.done.wait (%p5129_p11), %s438_s0, 256  }
  0xb5   : > { %4160 = vsyncadd (%p5129_p11), %s438_s0, 4294967040  ;;  %s4567_s13 = scalar_lea.vmem [#allocation13], %s3014_s15  ;;  %s5130_s6 = sld [smem:[#allocation22_spill]] }
  0xbb   : > { %p3016_p9 = scmp.ne.s32.totalorder %s5130_s6, 0 }
  0xbc   : > { %vm503_vm0 = vcmask (!%p3016_p9), 7168   ;;  %v4222_v16 = vmov (!%p3016_p9), 0.0  }
  0xbd   : > { %486 = sbr.rel (%p3016_p9) target bundleno = 198 (0xc6), region = 101  ;;  %487 = vst [vmem:[#allocation2] sm:$0x1] (!%p3016_p9), %v4222_v16  ;;  %488 = vst [vmem:[#allocation2 + $0x1] sm:$0x1] (!%p3016_p9), %v4222_v16 }
  0xbe   : > { %489 = vst [vmem:[#allocation2 + $0x2] sm:$0x1] (!%p3016_p9), %v4222_v16  ;;  %490 = vst [vmem:[#allocation2 + $0x3] sm:$0x1] (!%p3016_p9), %v4222_v16 }
  0xbf   : > { %491 = vst [vmem:[#allocation2 + $0x4] sm:$0x1] (!%p3016_p9), %v4222_v16  ;;  %492 = vst [vmem:[#allocation2 + $0x5] sm:$0x1] (!%p3016_p9), %v4222_v16 }
  0xc0   : > { %493 = vst [vmem:[#allocation2 + $0x6] sm:$0x1] (!%p3016_p9), %v4222_v16  ;;  %494 = vst [vmem:[#allocation2 + $0x7] sm:$0x1] (!%p3016_p9), %v4222_v16 }
  0xc1   : > { %495 = vst [vmem:[#allocation2 + $0x8] sm:$0x1] (!%p3016_p9), %v4222_v16  ;;  %496 = vst [vmem:[#allocation2 + $0x9] sm:$0x1] (!%p3016_p9), %v4222_v16 }
  0xc2   : > { %497 = vst [vmem:[#allocation2 + $0xa] sm:$0x1] (!%p3016_p9), %v4222_v16  ;;  %498 = vst [vmem:[#allocation2 + $0xb] sm:$0x1] (!%p3016_p9), %v4222_v16 }
  0xc3   : > { %499 = vst [vmem:[#allocation2 + $0xc] sm:$0x1] (!%p3016_p9), %v4222_v16  ;;  %500 = vst [vmem:[#allocation2 + $0xd] sm:$0x1] (!%p3016_p9), %v4222_v16 }
  0xc4   : > { %501 = vst [vmem:[#allocation2 + $0xe] sm:$0x1] %v4222_v16  ;;  %502 = vst [vmem:[#allocation2 + $0xf] sm:$0x1] %v4222_v16 }
  0xc5   : > { %504 = vst.msk [vmem:[#allocation3] sm:$0xff] %vm503_vm0, %v4222_v16  ;;  %505 = vst.msk [vmem:[#allocation3 + $0x8] sm:$0xff] %vm503_vm0, %v4222_v16 }
  0xc6 PF: > { %v3852_v17 = vld [vmem:[%s4544_s17] sm:$0xff]   ;;  %v4223_v18 = vmov 0.0   ;;  %v3854_v20 = vld [vmem:[%s4544_s17 + $0x8] sm:$0xff]   ;;  %vm4224_vm1 = vmmov 0   ;;  %v3856_v22 = vld [vmem:[%s4544_s17 + $0x10] sm:$0xff]   ;;  %vm2252_vm2 = vcmask 1040384  }
  0xc7   : > { %3320 = vmatprep.subr.bf16.mxu0 %v4223_v18  ;;  %3340 = vmatprep.subr.bf16.mxu1 %v4223_v18  ;;  %v3853_v19 = vld [vmem:[%s4544_s17 + $0x40] sm:$0xff]   ;;  %v3855_v21 = vld [vmem:[%s4544_s17 + $0x48] sm:$0xff]   ;;  %v3857_v23 = vld [vmem:[%s4544_s17 + $0x50] sm:$0xff]   ;;  %vm2318_vm3 = vcmask 1041409   ;;  %vm2321_vm4 = vcmask 1042434   ;;  %vm2324_vm5 = vcmask 1043459  }
  0xc8   : > { %3321 = vmatpush3.bf16.msra.mxu0 %v3852_v17  ;;  %3336 = vmatprep.mubr.msk.bf16.mxu0 %vm4224_vm1, %v4223_v18  ;;  %v3858_v24 = vld [vmem:[%s4544_s17 + $0x18] sm:$0xff]   ;;  %v3860_v26 = vld [vmem:[%s4544_s17 + $0x20] sm:$0xff]   ;;  %v3862_v28 = vld [vmem:[%s4544_s17 + $0x28] sm:$0xff]   ;;  %vm2327_vm6 = vcmask 1044484   ;;  %vm2330_vm7 = vcmask 1045509   ;;  %vm2333_vm8 = vcmask 1046534  }
  0xc9   : > { %3341 = vmatpush3.bf16.msra.mxu1 %v3853_v19  ;;  %3322 = vmatprep.subr.bf16.mxu0 %v4223_v18  ;;  %v3859_v25 = vld [vmem:[%s4544_s17 + $0x58] sm:$0xff]   ;;  %v3861_v27 = vld [vmem:[%s4544_s17 + $0x60] sm:$0xff]   ;;  %v3863_v29 = vld [vmem:[%s4544_s17 + $0x68] sm:$0xff]   ;;  %vm2336_vm9 = vcmask 1047559   ;;  %vm2356_vm10 = vcmask 7168   ;;  %s5131_s11 = sld [smem:[#allocation22_spill]] }
  0xca   : > { %3342 = vmatprep.subr.bf16.mxu1 %v4223_v18  ;;  %3356 = vmatprep.mubr.msk.bf16.mxu1 %vm4224_vm1, %v4223_v18  ;;  %v3864_v30 = vld [vmem:[%s4544_s17 + $0x30] sm:$0xff]   ;;  %v3866_v32 = vld [vmem:[%s4544_s17 + $0x38] sm:$0xff]   ;;  %v3868_v36 = vld [vmem:[%s4544_s17 + $0x80] sm:$0xff]  }
  0xcb   : > { %v3865_v31 = vld [vmem:[%s4544_s17 + $0x70] sm:$0xff]   ;;  %v3867_v33 = vld [vmem:[%s4544_s17 + $0x78] sm:$0xff]   ;;  %v3869_v37 = vld [vmem:[%s4544_s17 + $0xc0] sm:$0xff]  }
  0xcc   : > { %3323 = vmatpush3.bf16.msra.mxu0 %v3854_v20  ;;  %v4609_v34 = vld [vmem:[%s4550_s16] sm:$0x1]  ;;  %v4612_v35 = vld [vmem:[%s4550_s16 + $0x1] sm:$0x1]  ;;  %v3870_v38 = vld [vmem:[%s4544_s17 + $0x88] sm:$0xff]  }
  0xcd   : > { %3343 = vmatpush3.bf16.msra.mxu1 %v3855_v21  ;;  %3324 = vmatprep.subr.bf16.mxu0 %v4223_v18  ;;  %v3871_v39 = vld [vmem:[%s4544_s17 + $0xc8] sm:$0xff]   ;;  %v3872_v40 = vld [vmem:[%s4544_s17 + $0x90] sm:$0xff]   ;;  %v3874_v42 = vld [vmem:[%s4544_s17 + $0x98] sm:$0xff]  }
  0xce   : > { %3344 = vmatprep.subr.bf16.mxu1 %v4223_v18  ;;  %v3873_v41 = vld [vmem:[%s4544_s17 + $0xd0] sm:$0xff]   ;;  %v3875_v43 = vld [vmem:[%s4544_s17 + $0xd8] sm:$0xff]   ;;  %v3876_v44 = vld [vmem:[%s4544_s17 + $0xa0] sm:$0xff]  }
  0xcf   : > { %v3877_v45 = vld [vmem:[%s4544_s17 + $0xe0] sm:$0xff]   ;;  %v3878_v46 = vld [vmem:[%s4544_s17 + $0xa8] sm:$0xff]   ;;  %v3880_v48 = vld [vmem:[%s4544_s17 + $0xb0] sm:$0xff]   ;;  %p3145_p13 = scmp.ne.s32.totalorder %s5131_s11, 1 }
  0xd0   : > { %3325 = vmatpush3.bf16.msra.mxu0 %v3856_v22  ;;  %v3879_v47 = vld [vmem:[%s4544_s17 + $0xe8] sm:$0xff]   ;;  %v3881_v49 = vld [vmem:[%s4544_s17 + $0xf0] sm:$0xff]   ;;  %v3882_v50 = vld [vmem:[%s4544_s17 + $0xb8] sm:$0xff]  }
  0xd1   : > { %3345 = vmatpush3.bf16.msra.mxu1 %v3857_v23  ;;  %3326 = vmatprep.subr.bf16.mxu0 %v4223_v18  ;;  %v3883_v51 = vld [vmem:[%s4544_s17 + $0xf8] sm:$0xff]   ;;  %v4653_v52 = vld [vmem:[%s4550_s16 + $0x2] sm:$0x1]  ;;  %v4656_v53 = vld [vmem:[%s4550_s16 + $0x3] sm:$0x1] }
  0xd2   : > { %3346 = vmatprep.subr.bf16.mxu1 %v4223_v18  ;;  %v3884_v54 = vld [vmem:[%s4544_s17 + $0x100] sm:$0xff]   ;;  %v3886_v56 = vld [vmem:[%s4544_s17 + $0x108] sm:$0xff]   ;;  %v3888_v58 = vld [vmem:[%s4544_s17 + $0x110] sm:$0xff]  }
  0xd3   : > { %v3885_v55 = vld [vmem:[%s4544_s17 + $0x140] sm:$0xff]   ;;  %v3887_v57 = vld [vmem:[%s4544_s17 + $0x148] sm:$0xff]   ;;  %v3889_v59 = vld [vmem:[%s4544_s17 + $0x150] sm:$0xff]  }
  0xd4   : > { %3327 = vmatpush3.bf16.msra.mxu0 %v3858_v24  ;;  %v3890_v60 = vld [vmem:[%s4544_s17 + $0x118] sm:$0xff]   ;;  %v3892_v62 = vld [vmem:[%s4544_s17 + $0x120] sm:$0xff]   ;;  %v3894_v0 = vld [vmem:[%s4544_s17 + $0x128] sm:$0xff]  }
  0xd5   : > { %3347 = vmatpush3.bf16.msra.mxu1 %v3859_v25  ;;  %3328 = vmatprep.subr.bf16.mxu0 %v4223_v18  ;;  %v3891_v61 = vld [vmem:[%s4544_s17 + $0x158] sm:$0xff]   ;;  %v3893_v63 = vld [vmem:[%s4544_s17 + $0x160] sm:$0xff]   ;;  %v3895_v1 = vld [vmem:[%s4544_s17 + $0x168] sm:$0xff]  }
  0xd6   : > { %3348 = vmatprep.subr.bf16.mxu1 %v4223_v18  ;;  %v3896_v2 = vld [vmem:[%s4544_s17 + $0x130] sm:$0xff]   ;;  %v3898_v4 = vld [vmem:[%s4544_s17 + $0x138] sm:$0xff]   ;;  %v3900_v8 = vld [vmem:[%s4544_s17 + $0x180] sm:$0xff]  }
  0xd7   : > { %v3897_v3 = vld [vmem:[%s4544_s17 + $0x170] sm:$0xff]   ;;  %v3899_v5 = vld [vmem:[%s4544_s17 + $0x178] sm:$0xff]   ;;  %v3901_v9 = vld [vmem:[%s4544_s17 + $0x1c0] sm:$0xff]  }
  0xd8   : > { %3329 = vmatpush3.bf16.msra.mxu0 %v3860_v26  ;;  %v4697_v6 = vld [vmem:[%s4550_s16 + $0x4] sm:$0x1]  ;;  %v4700_v7 = vld [vmem:[%s4550_s16 + $0x5] sm:$0x1]  ;;  %v3902_v10 = vld [vmem:[%s4544_s17 + $0x188] sm:$0xff]  }
  0xd9   : > { %3349 = vmatpush3.bf16.msra.mxu1 %v3861_v27  ;;  %3330 = vmatprep.subr.bf16.mxu0 %v4223_v18  ;;  %v3903_v11 = vld [vmem:[%s4544_s17 + $0x1c8] sm:$0xff]   ;;  %v3904_v12 = vld [vmem:[%s4544_s17 + $0x190] sm:$0xff]   ;;  %v3906_v14 = vld [vmem:[%s4544_s17 + $0x198] sm:$0xff]  }
  0xda   : > { %3350 = vmatprep.subr.bf16.mxu1 %v4223_v18  ;;  %v3905_v13 = vld [vmem:[%s4544_s17 + $0x1d0] sm:$0xff]   ;;  %v3907_v15 = vld [vmem:[%s4544_s17 + $0x1d8] sm:$0xff]   ;;  %v3908_v16 = vld [vmem:[%s4544_s17 + $0x1a0] sm:$0xff]  }
  0xdb   : > { %v3909_v17 = vld [vmem:[%s4544_s17 + $0x1e0] sm:$0xff]   ;;  %v3910_v19 = vld [vmem:[%s4544_s17 + $0x1a8] sm:$0xff]   ;;  %v3912_v21 = vld [vmem:[%s4544_s17 + $0x1b0] sm:$0xff]  }
  0xdc   : > { %3331 = vmatpush3.bf16.msra.mxu0 %v3862_v28  ;;  %v3911_v20 = vld [vmem:[%s4544_s17 + $0x1e8] sm:$0xff]   ;;  %v3913_v22 = vld [vmem:[%s4544_s17 + $0x1f0] sm:$0xff]   ;;  %v3914_v23 = vld [vmem:[%s4544_s17 + $0x1b8] sm:$0xff]  }
  0xdd   : > { %3351 = vmatpush3.bf16.msra.mxu1 %v3863_v29  ;;  %3332 = vmatprep.subr.bf16.mxu0 %v4223_v18  ;;  %v3915_v24 = vld [vmem:[%s4544_s17 + $0x1f8] sm:$0xff]   ;;  %v4741_v25 = vld [vmem:[%s4550_s16 + $0x6] sm:$0x1]  ;;  %v4744_v26 = vld [vmem:[%s4550_s16 + $0x7] sm:$0x1] }
  0xde   : > { %3352 = vmatprep.subr.bf16.mxu1 %v4223_v18  ;;  %v3916_v27 = vld [vmem:[%s4544_s17 + $0x200] sm:$0xff]   ;;  %v3918_v29 = vld [vmem:[%s4544_s17 + $0x208] sm:$0xff]  }
  0xdf   : > { %v3917_v28 = vld [vmem:[%s4544_s17 + $0x240] sm:$0xff]  }
  0xe0   : > { %3333 = vmatpush3.bf16.msra.mxu0 %v3864_v30  ;;  %v2237_v30 = vunpack.c.l.bf16 %v4612_v35 }
  0xe1   : > { %3353 = vmatpush3.bf16.msra.mxu1 %v3865_v31  ;;  %3334 = vmatprep.subr.bf16.mxu0 %v4223_v18  ;;  %v3919_v31 = vld [vmem:[%s4544_s17 + $0x248] sm:$0xff]  }
  0xe2   : > { %3354 = vmatprep.subr.bf16.mxu1 %v4223_v18 }
  0xe4   : > { %3335 = vmatpush3.bf16.msra.mxu0 %v3866_v32  ;;  %v2256_v32 = vsel %vm2252_vm2, %v2237_v30, 0.0 }
  0xe5   : > { %3355 = vmatpush3.bf16.msra.mxu1 %v3867_v33  ;;  %3360 = vmatprep.subr.bf16.mxu0 %v4223_v18  ;;  %v3920_v33 = vld [vmem:[%s4544_s17 + $0x210] sm:$0xff]  }
  0xe6   : > { %3380 = vmatprep.subr.bf16.mxu1 %v4223_v18  ;;  %2257 = vadd.xlane.f32.xlu0 %v2256_v32  ;;  %v3944_v32 = vld [vmem:[%s4544_s17 + $0x2b0] sm:$0xff]  }
  0xe7   : > { %3337 = vmatmul.mubr.bf16.vlgmr.msra.gmra.mrb[0].mxu0 %v4609_v34 }
  0xe8   : > { %3357 = vmatmul.mubr.bf16.vlgmr.msra.gmra.mrb[0].mxu1 %v4612_v35  ;;  %3361 = vmatpush3.bf16.msra.mxu0 %v3868_v36  ;;  %v3921_v35 = vld [vmem:[%s4544_s17 + $0x250] sm:$0xff]   ;;  %v3922_v36 = vld [vmem:[%s4544_s17 + $0x218] sm:$0xff]  }
  0xe9   : > { %3381 = vmatpush3.bf16.msra.mxu1 %v3869_v37  ;;  %3362 = vmatprep.subr.bf16.mxu0 %v4223_v18  ;;  %v3923_v37 = vld [vmem:[%s4544_s17 + $0x258] sm:$0xff]  }
  0xea   : > { %3382 = vmatprep.subr.bf16.mxu1 %v4223_v18  ;;  %3376 = vmatprep.mubr.msk.bf16.mxu0 %vm4224_vm1, %v4223_v18 }
  0xeb   : > { %3396 = vmatprep.mubr.msk.bf16.mxu1 %vm4224_vm1, %v4223_v18 }
  0xec   : > { %3363 = vmatpush3.bf16.msra.mxu0 %v3870_v38  ;;  %v3924_v38 = vld [vmem:[%s4544_s17 + $0x220] sm:$0xff]  }
  0xed   : > { %3383 = vmatpush3.bf16.msra.mxu1 %v3871_v39  ;;  %3364 = vmatprep.subr.bf16.mxu0 %v4223_v18  ;;  %v3925_v39 = vld [vmem:[%s4544_s17 + $0x260] sm:$0xff]  }
  0xee   : > { %3384 = vmatprep.subr.bf16.mxu1 %v4223_v18 }
  0xf0   : > { %3365 = vmatpush3.bf16.msra.mxu0 %v3872_v40  ;;  %v3926_v40 = vld [vmem:[%s4544_s17 + $0x228] sm:$0xff]  }
  0xf1   : > { %3385 = vmatpush3.bf16.msra.mxu1 %v3873_v41  ;;  %3366 = vmatprep.subr.bf16.mxu0 %v4223_v18  ;;  %v771_v41 = vld [vmem:[%s4550_s16 + $0x9] sm:$0x1] }
  0xf2   : > { %3386 = vmatprep.subr.bf16.mxu1 %v4223_v18 }
  0xf4   : > { %3367 = vmatpush3.bf16.msra.mxu0 %v3874_v42  ;;  %v3927_v42 = vld [vmem:[%s4544_s17 + $0x268] sm:$0xff]  }
  0xf5   : > { %3387 = vmatpush3.bf16.msra.mxu1 %v3875_v43  ;;  %3368 = vmatprep.subr.bf16.mxu0 %v4223_v18  ;;  %v2238_v43 = vunpack.c.l.bf16 %v4653_v52 }
  0xf6   : > { %3388 = vmatprep.subr.bf16.mxu1 %v4223_v18 }
  0xf8   : > { %3369 = vmatpush3.bf16.msra.mxu0 %v3876_v44  ;;  %v2245_v44 = vunpack.c.l.bf16 %v771_v41 }
  0xf9   : > { %3389 = vmatpush3.bf16.msra.mxu1 %v3877_v45  ;;  %3370 = vmatprep.subr.bf16.mxu0 %v4223_v18  ;;  %v2259_v45 = vsel %vm2252_vm2, %v2238_v43, 0.0  ;;  %v3954_v43 = vld [vmem:[%s4544_s17 + $0x318] sm:$0xff]  }
  0xfa   : > { %3390 = vmatprep.subr.bf16.mxu1 %v4223_v18  ;;  %2260 = vadd.xlane.f32.xlu1 %v2259_v45  ;;  %v3956_v45 = vld [vmem:[%s4544_s17 + $0x320] sm:$0xff]  }
  0xfc   : > { %3371 = vmatpush3.bf16.msra.mxu0 %v3878_v46  ;;  %v2280_v46 = vsel %vm2252_vm2, %v2245_v44, 0.0  ;;  %v3955_v44 = vld [vmem:[%s4544_s17 + $0x358] sm:$0xff]  }
  0xfd   : > { %3391 = vmatpush3.bf16.msra.mxu1 %v3879_v47  ;;  %3372 = vmatprep.subr.bf16.mxu0 %v4223_v18  ;;  %v3928_v47 = vld [vmem:[%s4544_s17 + $0x230] sm:$0xff]  }
  0xfe   : > { %3392 = vmatprep.subr.bf16.mxu1 %v4223_v18  ;;  %2281 = vadd.xlane.f32.xlu0 %v2280_v46  ;;  %v3957_v46 = vld [vmem:[%s4544_s17 + $0x360] sm:$0xff]  }
 0x100   : > { %3373 = vmatpush3.bf16.msra.mxu0 %v3880_v48  ;;  %v4784_v48 = vld [vmem:[%s4550_s16 + $0xa] sm:$0x1] }
 0x101   : > { %3393 = vmatpush3.bf16.msra.mxu1 %v3881_v49  ;;  %3374 = vmatprep.subr.bf16.mxu0 %v4223_v18  ;;  %v3929_v49 = vld [vmem:[%s4544_s17 + $0x270] sm:$0xff]  }
 0x102   : > { %3394 = vmatprep.subr.bf16.mxu1 %v4223_v18 }
 0x104   : > { %3375 = vmatpush3.bf16.msra.mxu0 %v3882_v50  ;;  %v2246_v50 = vunpack.c.l.bf16 %v4784_v48 }
 0x105   : > { %3395 = vmatpush3.bf16.msra.mxu1 %v3883_v51  ;;  %3400 = vmatprep.subr.bf16.mxu0 %v4223_v18  ;;  %v2236_v51 = vunpack.c.l.bf16 %v4609_v34  ;;  %v3931_v34 = vld [vmem:[%s4544_s17 + $0x278] sm:$0xff]  }
 0x106   : > { %3420 = vmatprep.subr.bf16.mxu1 %v4223_v18 }
 0x107   : > { %3377 = vmatmul.mubr.bf16.vlgmr.msra.gmra.mrb[4].mxu0 %v4653_v52  ;;  %v770_v52 = vld [vmem:[%s4550_s16 + $0x8] sm:$0x1] }
 0x108   : > { %3397 = vmatmul.mubr.bf16.vlgmr.msra.gmra.mrb[4].mxu1 %v4656_v53  ;;  %3401 = vmatpush3.bf16.msra.mxu0 %v3884_v54  ;;  %v2239_v54 = vunpack.c.l.bf16 %v4656_v53  ;;  %v4801_v53 = vld [vmem:[%s4550_s16 + $0xb] sm:$0x1] }
 0x109   : > { %3421 = vmatpush3.bf16.msra.mxu1 %v3885_v55  ;;  %3402 = vmatprep.subr.bf16.mxu0 %v4223_v18  ;;  %v2283_v55 = vsel %vm2252_vm2, %v2246_v50, 0.0  ;;  %v3961_v50 = vld [vmem:[%s4544_s17 + $0x370] sm:$0xff]  }
 0x10a   : > { %3422 = vmatprep.subr.bf16.mxu1 %v4223_v18  ;;  %3416 = vmatprep.mubr.msk.bf16.mxu0 %vm4224_vm1, %v4223_v18 }
 0x10b   : > { %3436 = vmatprep.mubr.msk.bf16.mxu1 %vm4224_vm1, %v4223_v18  ;;  %2284 = vadd.xlane.f32.xlu1 %v2283_v55  ;;  %v3965_v55 = vld [vmem:[%s4544_s17 + $0x3c0] sm:$0xff]  }
 0x10c   : > { %3403 = vmatpush3.bf16.msra.mxu0 %v3886_v56  ;;  %v2253_v56 = vsel %vm2252_vm2, %v2236_v51, 0.0  ;;  %v3962_v51 = vld [vmem:[%s4544_s17 + $0x338] sm:$0xff]  }
 0x10d   : > { %3423 = vmatpush3.bf16.msra.mxu1 %v3887_v57  ;;  %3404 = vmatprep.subr.bf16.mxu0 %v4223_v18  ;;  %v2244_v57 = vunpack.c.l.bf16 %v770_v52 }
 0x10e   : > { %3424 = vmatprep.subr.bf16.mxu1 %v4223_v18  ;;  %2254 = vadd.xlane.f32.xlu0 %v2253_v56  ;;  %v3966_v56 = vld [vmem:[%s4544_s17 + $0x388] sm:$0xff]  }
 0x110   : > { %3405 = vmatpush3.bf16.msra.mxu0 %v3888_v58  ;;  %v3930_v58 = vld [vmem:[%s4544_s17 + $0x238] sm:$0xff]  }
 0x111   : > { %3425 = vmatpush3.bf16.msra.mxu1 %v3889_v59  ;;  %3406 = vmatprep.subr.bf16.mxu0 %v4223_v18  ;;  %v2262_v59 = vsel %vm2252_vm2, %v2239_v54, 0.0  ;;  %v3964_v54 = vld [vmem:[%s4544_s17 + $0x380] sm:$0xff]  }
 0x112   : > { %3426 = vmatprep.subr.bf16.mxu1 %v4223_v18  ;;  %2263 = vadd.xlane.f32.xlu1 %v2262_v59  ;;  %v3970_v59 = vld [vmem:[%s4544_s17 + $0x398] sm:$0xff]  }
 0x114   : > { %3407 = vmatpush3.bf16.msra.mxu0 %v3890_v60  ;;  %v2277_v60 = vsel %vm2252_vm2, %v2244_v57, 0.0  ;;  %v3967_v57 = vld [vmem:[%s4544_s17 + $0x3c8] sm:$0xff]  }
 0x115   : > { %3427 = vmatpush3.bf16.msra.mxu1 %v3891_v61  ;;  %3408 = vmatprep.subr.bf16.mxu0 %v4223_v18  ;;  %v3932_v61 = vld [vmem:[%s4544_s17 + $0x280] sm:$0xff]  }
 0x116   : > { %3428 = vmatprep.subr.bf16.mxu1 %v4223_v18  ;;  %2278 = vadd.xlane.f32.xlu0 %v2277_v60  ;;  %v3972_v60 = vld [vmem:[%s4544_s17 + $0x3a0] sm:$0xff]  }
 0x118   : > { %3409 = vmatpush3.bf16.msra.mxu0 %v3892_v62  ;;  %v2247_v62 = vunpack.c.l.bf16 %v4801_v53 }
 0x119   : > { %3429 = vmatpush3.bf16.msra.mxu1 %v3893_v63  ;;  %3410 = vmatprep.subr.bf16.mxu0 %v4223_v18  ;;  %v3933_v63 = vld [vmem:[%s4544_s17 + $0x2c0] sm:$0xff]  }
 0x11a   : > { %3430 = vmatprep.subr.bf16.mxu1 %v4223_v18 }
 0x11c   : > { %3411 = vmatpush3.bf16.msra.mxu0 %v3894_v0  ;;  %v2240_v0 = vunpack.c.l.bf16 %v4697_v6 }
 0x11d   : > { %3431 = vmatpush3.bf16.msra.mxu1 %v3895_v1  ;;  %3412 = vmatprep.subr.bf16.mxu0 %v4223_v18  ;;  %v4811_v1 = vld [vmem:[%s4550_s16 + $0xc] sm:$0x1] }
 0x11e   : > { %3432 = vmatprep.subr.bf16.mxu1 %v4223_v18 }
 0x120   : > { %3413 = vmatpush3.bf16.msra.mxu0 %v3896_v2  ;;  %v3934_v2 = vld [vmem:[%s4544_s17 + $0x288] sm:$0xff]  }
 0x121   : > { %3433 = vmatpush3.bf16.msra.mxu1 %v3897_v3  ;;  %3414 = vmatprep.subr.bf16.mxu0 %v4223_v18  ;;  %v2286_v3 = vsel %vm2252_vm2, %v2247_v62, 0.0  ;;  %v778_v62 = vld [vmem:[#allocation2] sm:$0x1] }
 0x122   : > { %3434 = vmatprep.subr.bf16.mxu1 %v4223_v18  ;;  %2287 = vadd.xlane.f32.xlu1 %v2286_v3 }
 0x124   : > { %3415 = vmatpush3.bf16.msra.mxu0 %v3898_v4  ;;  %v2248_v4 = vunpack.c.l.bf16 %v4811_v1 }
 0x125   : > { %3435 = vmatpush3.bf16.msra.mxu1 %v3899_v5  ;;  %3440 = vmatprep.subr.bf16.mxu0 %v4223_v18  ;;  %v3935_v5 = vld [vmem:[%s4544_s17 + $0x2c8] sm:$0xff]  }
 0x126   : > { %3460 = vmatprep.subr.bf16.mxu1 %v4223_v18 }
 0x127   : > { %3417 = vmatmul.mubr.bf16.vlgmr.msra.gmra.mrb[8].mxu0 %v4697_v6  ;;  %v2265_v6 = vsel %vm2252_vm2, %v2240_v0, 0.0  ;;  %v779_v0 = vld [vmem:[#allocation2 + $0x1] sm:$0x1] }
 0x128   : > { %3437 = vmatmul.mubr.bf16.vlgmr.msra.gmra.mrb[8].mxu1 %v4700_v7  ;;  %3441 = vmatpush3.bf16.msra.mxu0 %v3900_v8  ;;  %v2241_v8 = vunpack.c.l.bf16 %v4700_v7 }
 0x129   : > { %3461 = vmatpush3.bf16.msra.mxu1 %v3901_v9  ;;  %3442 = vmatprep.subr.bf16.mxu0 %v4223_v18  ;;  %v4826_v9 = vld [vmem:[%s4550_s16 + $0xd] sm:$0x1] }
 0x12a   : > { %3462 = vmatprep.subr.bf16.mxu1 %v4223_v18  ;;  %3456 = vmatprep.mubr.msk.bf16.mxu0 %vm4224_vm1, %v4223_v18  ;;  %v2249_v7 = vunpack.c.l.bf16 %v4826_v9 }
 0x12b   : > { %3476 = vmatprep.mubr.msk.bf16.mxu1 %vm4224_vm1, %v4223_v18  ;;  %2266 = vadd.xlane.f32.xlu0 %v2265_v6 }
 0x12c   : > { %3443 = vmatpush3.bf16.msra.mxu0 %v3902_v10  ;;  %v3936_v10 = vld [vmem:[%s4544_s17 + $0x290] sm:$0xff]  }
 0x12d   : > { %3463 = vmatpush3.bf16.msra.mxu1 %v3903_v11  ;;  %3444 = vmatprep.subr.bf16.mxu0 %v4223_v18  ;;  %v2289_v11 = vsel %vm2252_vm2, %v2248_v4, 0.0 }
 0x12e   : > { %3464 = vmatprep.subr.bf16.mxu1 %v4223_v18  ;;  %2290 = vadd.xlane.f32.xlu1 %v2289_v11 }
 0x130   : > { %3445 = vmatpush3.bf16.msra.mxu0 %v3904_v12  ;;  %v3937_v12 = vld [vmem:[%s4544_s17 + $0x2d0] sm:$0xff]  }
 0x131   : > { %3465 = vmatpush3.bf16.msra.mxu1 %v3905_v13  ;;  %3446 = vmatprep.subr.bf16.mxu0 %v4223_v18  ;;  %v2268_v13 = vsel %vm2252_vm2, %v2241_v8, 0.0 }
 0x132   : > { %3466 = vmatprep.subr.bf16.mxu1 %v4223_v18  ;;  %2269 = vadd.xlane.f32.xlu0 %v2268_v13 }
 0x134   : > { %3447 = vmatpush3.bf16.msra.mxu0 %v3906_v14  ;;  %v2242_v14 = vunpack.c.l.bf16 %v4741_v25 }
 0x135   : > { %3467 = vmatpush3.bf16.msra.mxu1 %v3907_v15  ;;  %3448 = vmatprep.subr.bf16.mxu0 %v4223_v18  ;;  %v4837_v15 = vld [vmem:[%s4550_s16 + $0xe] sm:$0x1] }
 0x136   : > { %3468 = vmatprep.subr.bf16.mxu1 %v4223_v18 }
 0x138   : > { %3449 = vmatpush3.bf16.msra.mxu0 %v3908_v16  ;;  %v3938_v16 = vld [vmem:[%s4544_s17 + $0x298] sm:$0xff]  }
 0x139   : > { %3469 = vmatpush3.bf16.msra.mxu1 %v3909_v17  ;;  %3450 = vmatprep.subr.bf16.mxu0 %v4223_v18  ;;  %v2292_v17 = vsel %vm2252_vm2, %v2249_v7, 0.0 }
 0x13a   : > { %3470 = vmatprep.subr.bf16.mxu1 %v4223_v18  ;;  %2293 = vadd.xlane.f32.xlu1 %v2292_v17  ;;  %v780_v17 = vld [vmem:[#allocation2 + $0x2] sm:$0x1] }
 0x13c   : > { %3451 = vmatpush3.bf16.msra.mxu0 %v3910_v19  ;;  %v2250_v19 = vunpack.c.l.bf16 %v4837_v15 }
 0x13d   : > { %3471 = vmatpush3.bf16.msra.mxu1 %v3911_v20  ;;  %3452 = vmatprep.subr.bf16.mxu0 %v4223_v18  ;;  %v3939_v20 = vld [vmem:[%s4544_s17 + $0x2d8] sm:$0xff]  }
 0x13e   : > { %3472 = vmatprep.subr.bf16.mxu1 %v4223_v18 }
 0x140   : > { %3453 = vmatpush3.bf16.msra.mxu0 %v3912_v21  ;;  %v2271_v21 = vsel %vm2252_vm2, %v2242_v14, 0.0  ;;  %v3978_v14 = vld [vmem:[%s4544_s17 + $0x3b8] sm:$0xff]  }
 0x141   : > { %3473 = vmatpush3.bf16.msra.mxu1 %v3913_v22  ;;  %3454 = vmatprep.subr.bf16.mxu0 %v4223_v18  ;;  %v2243_v22 = vunpack.c.l.bf16 %v4744_v26 }
 0x142   : > { %3474 = vmatprep.subr.bf16.mxu1 %v4223_v18  ;;  %2272 = vadd.xlane.f32.xlu0 %v2271_v21 }
 0x144   : > { %3455 = vmatpush3.bf16.msra.mxu0 %v3914_v23  ;;  %v4848_v23 = vld [vmem:[%s4550_s16 + $0xf] sm:$0x1] }
 0x145   : > { %3475 = vmatpush3.bf16.msra.mxu1 %v3915_v24  ;;  %3480 = vmatprep.subr.bf16.mxu0 %v4223_v18  ;;  %v3940_v24 = vld [vmem:[%s4544_s17 + $0x2a0] sm:$0xff]  }
 0x146   : > { %3500 = vmatprep.subr.bf16.mxu1 %v4223_v18 }
 0x147   : > { %3457 = vmatmul.mubr.bf16.vlgmr.msra.gmra.mrb[12].mxu0 %v4741_v25  ;;  %v2295_v25 = vsel %vm2252_vm2, %v2250_v19, 0.0  ;;  %v781_v19 = vld [vmem:[#allocation2 + $0x3] sm:$0x1] }
 0x148   : > { %3477 = vmatmul.mubr.bf16.vlgmr.msra.gmra.mrb[12].mxu1 %v4744_v26  ;;  %3481 = vmatpush3.bf16.msra.mxu0 %v3916_v27  ;;  %v2251_v27 = vunpack.c.l.bf16 %v4848_v23  ;;  %v2274_v26 = vsel %vm2252_vm2, %v2243_v22, 0.0 }
 0x149   : > { %3501 = vmatpush3.bf16.msra.mxu1 %v3917_v28  ;;  %3482 = vmatprep.subr.bf16.mxu0 %v4223_v18  ;;  %v3941_v28 = vld [vmem:[%s4544_s17 + $0x2e0] sm:$0xff]  }
 0x14a   : > { %3502 = vmatprep.subr.bf16.mxu1 %v4223_v18  ;;  %3496 = vmatprep.mubr.msk.bf16.mxu0 %vm4224_vm1, %v4223_v18  ;;  %v2298_v30 = vsel %vm2252_vm2, %v2251_v27, 0.0 }
 0x14b   : > { %3516 = vmatprep.mubr.msk.bf16.mxu1 %vm4224_vm1, %v4223_v18  ;;  %2296 = vadd.xlane.f32.xlu1 %v2295_v25 }
 0x14c   : > { %3483 = vmatpush3.bf16.msra.mxu0 %v3918_v29  ;;  %v3942_v29 = vld [vmem:[%s4544_s17 + $0x2a8] sm:$0xff]   ;;  %2275 = vadd.xlane.f32.xlu0 %v2274_v26 }
 0x14d   : > { %3503 = vmatpush3.bf16.msra.mxu1 %v3919_v31  ;;  %3484 = vmatprep.subr.bf16.mxu0 %v4223_v18  ;;  %v3943_v31 = vld [vmem:[%s4544_s17 + $0x2e8] sm:$0xff]  }
 0x14e   : > { %3504 = vmatprep.subr.bf16.mxu1 %v4223_v18 }
 0x14f   : > { %2299 = vadd.xlane.f32.xlu1 %v2298_v30 }
 0x150   : > { %3485 = vmatpush3.bf16.msra.mxu0 %v3920_v33  ;;  %v3945_v33 = vld [vmem:[%s4544_s17 + $0x2f0] sm:$0xff]  }
 0x151   : > { %3505 = vmatpush3.bf16.msra.mxu1 %v3921_v35  ;;  %3486 = vmatprep.subr.bf16.mxu0 %v4223_v18  ;;  %v3946_v35 = vld [vmem:[%s4544_s17 + $0x2b8] sm:$0xff]  }
 0x152   : > { %3506 = vmatprep.subr.bf16.mxu1 %v4223_v18 }
 0x154   : > { %3487 = vmatpush3.bf16.msra.mxu0 %v3922_v36  ;;  %v3947_v36 = vld [vmem:[%s4544_s17 + $0x2f8] sm:$0xff]  }
 0x155   : > { %3507 = vmatpush3.bf16.msra.mxu1 %v3923_v37  ;;  %3488 = vmatprep.subr.bf16.mxu0 %v4223_v18  ;;  %v3948_v37 = vld [vmem:[%s4544_s17 + $0x300] sm:$0xff]  }
 0x156   : > { %3508 = vmatprep.subr.bf16.mxu1 %v4223_v18 }
 0x158   : > { %3489 = vmatpush3.bf16.msra.mxu0 %v3924_v38  ;;  %v3949_v38 = vld [vmem:[%s4544_s17 + $0x340] sm:$0xff]  }
 0x159   : > { %3509 = vmatpush3.bf16.msra.mxu1 %v3925_v39  ;;  %3490 = vmatprep.subr.bf16.mxu0 %v4223_v18  ;;  %v3950_v39 = vld [vmem:[%s4544_s17 + $0x308] sm:$0xff]  }
 0x15a   : > { %3510 = vmatprep.subr.bf16.mxu1 %v4223_v18 }
 0x15c   : > { %3491 = vmatpush3.bf16.msra.mxu0 %v3926_v40  ;;  %v3951_v40 = vld [vmem:[%s4544_s17 + $0x348] sm:$0xff]  }
 0x15d   : > { %3511 = vmatpush3.bf16.msra.mxu1 %v3927_v42  ;;  %3492 = vmatprep.subr.bf16.mxu0 %v4223_v18  ;;  %v3953_v42 = vld [vmem:[%s4544_s17 + $0x350] sm:$0xff]  }
 0x15e   : > { %3512 = vmatprep.subr.bf16.mxu1 %v4223_v18 }
 0x160   : > { %3493 = vmatpush3.bf16.msra.mxu0 %v3928_v47  ;;  %v3958_v47 = vld [vmem:[%s4544_s17 + $0x328] sm:$0xff]  }
 0x161   : > { %3513 = vmatpush3.bf16.msra.mxu1 %v3929_v49  ;;  %3494 = vmatprep.subr.bf16.mxu0 %v4223_v18  ;;  %v3960_v49 = vld [vmem:[%s4544_s17 + $0x330] sm:$0xff]  }
 0x162   : > { %3514 = vmatprep.subr.bf16.mxu1 %v4223_v18 }
 0x164   : > { %3495 = vmatpush3.bf16.msra.mxu0 %v3930_v58  ;;  %v3968_v58 = vld [vmem:[%s4544_s17 + $0x390] sm:$0xff]  }
 0x165   : > { %3515 = vmatpush3.bf16.msra.mxu1 %v3931_v34  ;;  %3520 = vmatprep.subr.bf16.mxu0 %v4223_v18  ;;  %v3969_v34 = vld [vmem:[%s4544_s17 + $0x3d0] sm:$0xff]  }
 0x166   : > { %3540 = vmatprep.subr.bf16.mxu1 %v4223_v18 }
 0x167   : > { %3497 = vmatmul.mubr.bf16.vlgmr.msra.gmra.mrb[16].mxu0 %v770_v52  ;;  %v3963_v52 = vld [vmem:[%s4544_s17 + $0x378] sm:$0xff]  }
 0x168   : > { %3517 = vmatmul.mubr.bf16.vlgmr.msra.gmra.mrb[16].mxu1 %v771_v41  ;;  %3521 = vmatpush3.bf16.msra.mxu0 %v3932_v61  ;;  %v3952_v41 = vld [vmem:[%s4544_s17 + $0x310] sm:$0xff]   ;;  %v3973_v61 = vld [vmem:[%s4544_s17 + $0x3e0] sm:$0xff]  }
 0x169   : > { %3541 = vmatpush3.bf16.msra.mxu1 %v3933_v63  ;;  %3522 = vmatprep.subr.bf16.mxu0 %v4223_v18  ;;  %v3974_v63 = vld [vmem:[%s4544_s17 + $0x3a8] sm:$0xff]  }
 0x16a   : > { %3542 = vmatprep.subr.bf16.mxu1 %v4223_v18  ;;  %3536 = vmatprep.mubr.msk.bf16.mxu0 %vm4224_vm1, %v4223_v18 }
 0x16b   : > { %3556 = vmatprep.mubr.msk.bf16.mxu1 %vm4224_vm1, %v4223_v18 }
 0x16c   : > { %3523 = vmatpush3.bf16.msra.mxu0 %v3934_v2 }
 0x16d   : > { %3543 = vmatpush3.bf16.msra.mxu1 %v3935_v5  ;;  %3524 = vmatprep.subr.bf16.mxu0 %v4223_v18 }
 0x16e   : > { %3544 = vmatprep.subr.bf16.mxu1 %v4223_v18 }
 0x170   : > { %3525 = vmatpush3.bf16.msra.mxu0 %v3936_v10  ;;  %v3976_v10 = vld [vmem:[%s4544_s17 + $0x3b0] sm:$0xff]  }
 0x171   : > { %3545 = vmatpush3.bf16.msra.mxu1 %v3937_v12  ;;  %3526 = vmatprep.subr.bf16.mxu0 %v4223_v18  ;;  %v3977_v12 = vld [vmem:[%s4544_s17 + $0x3f0] sm:$0xff]  }
 0x172   : > { %3546 = vmatprep.subr.bf16.mxu1 %v4223_v18 }
 0x173   : > { %v2258_v30 = vpop.xlane.xlu0 %2257 }
 0x174   : > { %3527 = vmatpush3.bf16.msra.mxu0 %v3938_v16  ;;  %v3979_v16 = vld [vmem:[%s4544_s17 + $0x3f8] sm:$0xff]  }
 0x175   : > { %3547 = vmatpush3.bf16.msra.mxu1 %v3939_v20  ;;  %3528 = vmatprep.subr.bf16.mxu0 %v4223_v18 }
 0x176   : > { %3548 = vmatprep.subr.bf16.mxu1 %v4223_v18 }
 0x178   : > { %3529 = vmatpush3.bf16.msra.mxu0 %v3940_v24 }
 0x179   : > { %3549 = vmatpush3.bf16.msra.mxu1 %v3941_v28  ;;  %3530 = vmatprep.subr.bf16.mxu0 %v4223_v18 }
 0x17a   : > { %3550 = vmatprep.subr.bf16.mxu1 %v4223_v18 }
 0x17c   : > { %3531 = vmatpush3.bf16.msra.mxu0 %v3942_v29 }
 0x17d   : > { %3551 = vmatpush3.bf16.msra.mxu1 %v3943_v31  ;;  %3532 = vmatprep.subr.bf16.mxu0 %v4223_v18 }
 0x17e   : > { %3552 = vmatprep.subr.bf16.mxu1 %v4223_v18 }
 0x180   : > { %3533 = vmatpush3.bf16.msra.mxu0 %v3944_v32 }
 0x181   : > { %3553 = vmatpush3.bf16.msra.mxu1 %v3945_v33  ;;  %3534 = vmatprep.subr.bf16.mxu0 %v4223_v18 }
 0x182   : > { %3554 = vmatprep.subr.bf16.mxu1 %v4223_v18 }
 0x184   : > { %3535 = vmatpush3.bf16.msra.mxu0 %v3946_v35 }
 0x185   : > { %3555 = vmatpush3.bf16.msra.mxu1 %v3947_v36  ;;  %3560 = vmatprep.subr.bf16.mxu0 %v4223_v18  ;;  %v2317_v36 = vrot.slane %v2258_v30, 7 }
 0x186   : > { %3580 = vmatprep.subr.bf16.mxu1 %v4223_v18 }
 0x187   : > { %3537 = vmatmul.mubr.bf16.vlgmr.msra.gmra.mrb[20].mxu0 %v4784_v48  ;;  %v3959_v48 = vld [vmem:[%s4544_s17 + $0x368] sm:$0xff]   ;;  %v2261_v31 = vpop.xlane.xlu1 %2260 }
 0x188   : > { %3557 = vmatmul.mubr.bf16.vlgmr.msra.gmra.mrb[20].mxu1 %v4801_v53  ;;  %3561 = vmatpush3.bf16.msra.mxu0 %v3948_v37  ;;  %v3971_v53 = vld [vmem:[%s4544_s17 + $0x3d8] sm:$0xff]   ;;  %v2320_v37 = vrot.slane %v2261_v31, 6 }
 0x189   : > { %3581 = vmatpush3.bf16.msra.mxu1 %v3949_v38  ;;  %3562 = vmatprep.subr.bf16.mxu0 %v4223_v18 }
 0x18a   : > { %3582 = vmatprep.subr.bf16.mxu1 %v4223_v18  ;;  %3576 = vmatprep.mubr.msk.bf16.mxu0 %vm4224_vm1, %v4223_v18 }
 0x18b   : > { %3596 = vmatprep.mubr.msk.bf16.mxu1 %vm4224_vm1, %v4223_v18  ;;  %v2282_v32 = vpop.xlane.xlu0 %2281 }
 0x18c   : > { %3563 = vmatpush3.bf16.msra.mxu0 %v3950_v39  ;;  %v2338_v38 = vrot.slane %v2282_v32, 7  ;;  %v782_v39 = vld [vmem:[#allocation2 + $0x4] sm:$0x1] }
 0x18d   : > { %3583 = vmatpush3.bf16.msra.mxu1 %v3951_v40  ;;  %3564 = vmatprep.subr.bf16.mxu0 %v4223_v18 }
 0x18e   : > { %3584 = vmatprep.subr.bf16.mxu1 %v4223_v18 }
 0x190   : > { %3565 = vmatpush3.bf16.msra.mxu0 %v3952_v41 }
 0x191   : > { %3585 = vmatpush3.bf16.msra.mxu1 %v3953_v42  ;;  %3566 = vmatprep.subr.bf16.mxu0 %v4223_v18  ;;  %v783_v42 = vld [vmem:[#allocation2 + $0x5] sm:$0x1] }
 0x192   : > { %3586 = vmatprep.subr.bf16.mxu1 %v4223_v18 }
 0x194   : > { %3567 = vmatpush3.bf16.msra.mxu0 %v3954_v43 }
 0x195   : > { %3587 = vmatpush3.bf16.msra.mxu1 %v3955_v44  ;;  %3568 = vmatprep.subr.bf16.mxu0 %v4223_v18 }
 0x196   : > { %3588 = vmatprep.subr.bf16.mxu1 %v4223_v18 }
 0x198   : > { %3569 = vmatpush3.bf16.msra.mxu0 %v3956_v45 }
 0x199   : > { %3589 = vmatpush3.bf16.msra.mxu1 %v3957_v46  ;;  %3570 = vmatprep.subr.bf16.mxu0 %v4223_v18 }
 0x19a   : > { %3590 = vmatprep.subr.bf16.mxu1 %v4223_v18 }
 0x19b   : > { %v2255_v33 = vpop.xlane.xlu0 %2254 }
 0x19c   : > { %3571 = vmatpush3.bf16.msra.mxu0 %v3958_v47  ;;  %v2319_v40 = vsel %vm2318_vm3, %v2317_v36, %v2255_v33 }
 0x19d   : > { %3591 = vmatpush3.bf16.msra.mxu1 %v3959_v48  ;;  %3572 = vmatprep.subr.bf16.mxu0 %v4223_v18 }
 0x19e   : > { %3592 = vmatprep.subr.bf16.mxu1 %v4223_v18 }
 0x1a0   : > { %3573 = vmatpush3.bf16.msra.mxu0 %v3960_v49 }
 0x1a1   : > { %3593 = vmatpush3.bf16.msra.mxu1 %v3961_v50  ;;  %3574 = vmatprep.subr.bf16.mxu0 %v4223_v18  ;;  %v2322_v50 = vsel %vm2321_vm4, %v2320_v37, %v2319_v40  ;;  %v786_v37 = vld [vmem:[#allocation2 + $0x8] sm:$0x1] }
 0x1a2   : > { %3594 = vmatprep.subr.bf16.mxu1 %v4223_v18 }
 0x1a3   : > { %v2279_v35 = vpop.xlane.xlu0 %2278 }
 0x1a4   : > { %3575 = vmatpush3.bf16.msra.mxu0 %v3962_v51  ;;  %v2339_v51 = vsel %vm2318_vm3, %v2338_v38, %v2279_v35  ;;  %v787_v38 = vld [vmem:[#allocation2 + $0x9] sm:$0x1] }
 0x1a5   : > { %3595 = vmatpush3.bf16.msra.mxu1 %v3963_v52  ;;  %3600 = vmatprep.subr.bf16.mxu0 %v4223_v18 }
 0x1a6   : > { %3620 = vmatprep.subr.bf16.mxu1 %v4223_v18 }
 0x1a7   : > { %3577 = vmatmul.mubr.bf16.vlgmr.msra.gmra.mrb[24].mxu0 %v4811_v1  ;;  %v3975_v1 = vld [vmem:[%s4544_s17 + $0x3e8] sm:$0xff]  }
 0x1a8   : > { %3597 = vmatmul.mubr.bf16.vlgmr.msra.gmra.mrb[24].mxu1 %v4826_v9  ;;  %3601 = vmatpush3.bf16.msra.mxu0 %v3964_v54 }
 0x1a9   : > { %3621 = vmatpush3.bf16.msra.mxu1 %v3965_v55  ;;  %3602 = vmatprep.subr.bf16.mxu0 %v4223_v18 }
 0x1aa   : > { %3622 = vmatprep.subr.bf16.mxu1 %v4223_v18  ;;  %3616 = vmatprep.mubr.msk.bf16.mxu0 %vm4224_vm1, %v4223_v18 }
 0x1ab   : > { %3636 = vmatprep.mubr.msk.bf16.mxu1 %vm4224_vm1, %v4223_v18 }
 0x1ac   : > { %3603 = vmatpush3.bf16.msra.mxu0 %v3966_v56 }
 0x1ad   : > { %3623 = vmatpush3.bf16.msra.mxu1 %v3967_v57  ;;  %3604 = vmatprep.subr.bf16.mxu0 %v4223_v18 }
 0x1ae   : > { %3624 = vmatprep.subr.bf16.mxu1 %v4223_v18 }
 0x1b0   : > { %3605 = vmatpush3.bf16.msra.mxu0 %v3968_v58 }
 0x1b1   : > { %3625 = vmatpush3.bf16.msra.mxu1 %v3969_v34  ;;  %3606 = vmatprep.subr.bf16.mxu0 %v4223_v18 }
 0x1b2   : > { %3626 = vmatprep.subr.bf16.mxu1 %v4223_v18 }
 0x1b4   : > { %3607 = vmatpush3.bf16.msra.mxu0 %v3970_v59 }
 0x1b5   : > { %3627 = vmatpush3.bf16.msra.mxu1 %v3971_v53  ;;  %3608 = vmatprep.subr.bf16.mxu0 %v4223_v18 }
 0x1b6   : > { %3628 = vmatprep.subr.bf16.mxu1 %v4223_v18 }
 0x1b8   : > { %3609 = vmatpush3.bf16.msra.mxu0 %v3972_v60  ;;  %v2267_v43 = vpop.xlane.xlu0 %2266 }
 0x1b9   : > { %3629 = vmatpush3.bf16.msra.mxu1 %v3973_v61  ;;  %3610 = vmatprep.subr.bf16.mxu0 %v4223_v18  ;;  %v2326_v34 = vrot.slane %v2267_v43, 4 }
 0x1ba   : > { %v876_v2 = vpop.f32.mrb[0].mxu0  ;;  %3630 = vmatprep.subr.bf16.mxu1 %v4223_v18 }
 0x1bb   : > { %v2202_v3 = vadd.f32 %v876_v2, %v778_v62  ;;  %v964_v4 = vpop.f32.mrb[0].mxu1  ;;  %v3338_v5 = vpop.f32.mrb[1].mxu0 }
 0x1bc   : > { %v2203_v6 = vadd.f32 %v964_v4, %v779_v0  ;;  %v3358_v8 = vpop.f32.mrb[1].mxu1  ;;  %v879_v9 = vpop.f32.mrb[2].mxu0  ;;  %3611 = vmatpush3.bf16.msra.mxu0 %v3974_v63 }
 0x1bd   : > { %2218 = vst [vmem:[#allocation2] sm:$0x1] %v2202_v3  ;;  %v967_v11 = vpop.f32.mrb[2].mxu1  ;;  %3631 = vmatpush3.bf16.msra.mxu1 %v3975_v1  ;;  %v3339_v7 = vpop.f32.mrb[3].mxu0  ;;  %3612 = vmatprep.subr.bf16.mxu0 %v4223_v18 }
 0x1be   : > { %2219 = vst [vmem:[#allocation2 + $0x1] sm:$0x1] %v2203_v6  ;;  %v3359_v13 = vpop.f32.mrb[3].mxu1  ;;  %3632 = vmatprep.subr.bf16.mxu1 %v4223_v18 }
 0x1bf   : > { %v2270_v62 = vpop.xlane.xlu0 %2269 }
 0x1c0   : > { %3613 = vmatpush3.bf16.msra.mxu0 %v3976_v10  ;;  %v2329_v0 = vrot.slane %v2270_v62, 3 }
 0x1c1   : > { %3633 = vmatpush3.bf16.msra.mxu1 %v3977_v12  ;;  %3614 = vmatprep.subr.bf16.mxu0 %v4223_v18 }
 0x1c2   : > { %3634 = vmatprep.subr.bf16.mxu1 %v4223_v18 }
 0x1c4   : > { %3615 = vmatpush3.bf16.msra.mxu0 %v3978_v14  ;;  %v2234_v14 = vld [vmem:[#allocation3] sm:$0xff] }
 0x1c5   : > { %3635 = vmatpush3.bf16.msra.mxu1 %v3979_v16 }
 0x1c7   : > { %3617 = vmatmul.mubr.bf16.vlgmr.msra.gmra.mrb[28].mxu0 %v4837_v15  ;;  %v2285_v15 = vpop.xlane.xlu1 %2284 }
 0x1c8   : > { %3637 = vmatmul.mubr.bf16.vlgmr.msra.gmra.mrb[28].mxu1 %v4848_v23  ;;  %v2340_v45 = vrot.slane %v2285_v15, 6 }
 0x1ca   : > { %v2341_v60 = vsel %vm2321_vm4, %v2340_v45, %v2339_v51 }
 0x1cb   : > { %v2264_v23 = vpop.xlane.xlu1 %2263 }
 0x1cc   : > { %v2323_v46 = vrot.slane %v2264_v23, 5 }
 0x1ce   : > { %v2325_v53 = vsel %vm2324_vm5, %v2323_v46, %v2322_v50  ;;  %v789_v50 = vld [vmem:[#allocation2 + $0xb] sm:$0x1] }
 0x1cf   : > { %v2288_v41 = vpop.xlane.xlu1 %2287  ;;  %v2328_v2 = vsel %vm2327_vm6, %v2326_v34, %v2325_v53  ;;  %v2273_v5 = vpop.xlane.xlu0 %2272 }
 0x1d0   : > { %v2342_v58 = vrot.slane %v2288_v41, 5  ;;  %v2331_v8 = vsel %vm2330_vm7, %v2329_v0, %v2328_v2  ;;  %v2332_v9 = vrot.slane %v2273_v5, 2 }
 0x1d2   : > { %v2343_v1 = vsel %vm2324_vm5, %v2342_v58, %v2341_v60  ;;  %v2334_v7 = vsel %vm2333_vm8, %v2332_v9, %v2331_v8  ;;  %v790_v60 = vld [vmem:[#allocation2 + $0xc] sm:$0x1]  ;;  %v792_v9 = vld [vmem:[#allocation2 + $0xe] sm:$0x1] }
 0x1d3   : > { %v2291_v61 = vpop.xlane.xlu1 %2290 }
 0x1d4   : > { %v2344_v63 = vrot.slane %v2291_v61, 4  ;;  %v791_v61 = vld [vmem:[#allocation2 + $0xd] sm:$0x1] }
 0x1d6   : > { %v2345_v6 = vsel %vm2327_vm6, %v2344_v63, %v2343_v1 }
 0x1d7   : > { %v2294_v3 = vpop.xlane.xlu1 %2293 }
 0x1d8   : > { %v2346_v4 = vrot.slane %v2294_v3, 3 }
 0x1d9   : > { %v2276_v13 = vpop.xlane.xlu0 %2275 }
 0x1da   : > { %v1052_v20 = vpop.f32.mrb[4].mxu0  ;;  %v2347_v11 = vsel %vm2330_vm7, %v2346_v4, %v2345_v6  ;;  %v2335_v16 = vrot.slane %v2276_v13, 1 }
 0x1db   : > { %v2204_v21 = vadd.f32 %v1052_v20, %v780_v17  ;;  %v1140_v22 = vpop.f32.mrb[4].mxu1  ;;  %v3378_v24 = vpop.f32.mrb[5].mxu0 }
 0x1dc   : > { %v2205_v25 = vadd.f32 %v1140_v22, %v781_v19  ;;  %v3398_v27 = vpop.f32.mrb[5].mxu1  ;;  %v1055_v28 = vpop.f32.mrb[6].mxu0  ;;  %v2337_v19 = vsel %vm2336_vm9, %v2335_v16, %v2334_v7  ;;  %v2235_v22 = vld [vmem:[#allocation3 + $0x8] sm:$0xff] }
 0x1dd   : > { %2220 = vst [vmem:[#allocation2 + $0x2] sm:$0x1] %v2204_v21  ;;  %v1143_v26 = vpop.f32.mrb[6].mxu1  ;;  %v3379_v29 = vpop.f32.mrb[7].mxu0  ;;  %v2354_v21 = vadd.f32 %v2337_v19, %v2234_v14  ;;  %v784_v28 = vld [vmem:[#allocation2 + $0x6] sm:$0x1] }
 0x1de   : > { %2221 = vst [vmem:[#allocation2 + $0x3] sm:$0x1] %v2205_v25  ;;  %v3399_v18 = vpop.f32.mrb[7].mxu1  ;;  %v2297_v10 = vpop.xlane.xlu1 %2296  ;;  %v785_v26 = vld [vmem:[#allocation2 + $0x7] sm:$0x1] }
 0x1df   : > { %v2348_v12 = vrot.slane %v2297_v10, 2  ;;  %2357 = vst.msk [vmem:[#allocation3] sm:$0xff] %vm2356_vm10, %v2354_v21  ;;  %v793_v10 = vld [vmem:[#allocation2 + $0xf] sm:$0x1] }
 0x1e1   : > { %v2349_v17 = vsel %vm2333_vm8, %v2348_v12, %v2347_v11 }
 0x1e2   : > { %v2300_v20 = vpop.xlane.xlu1 %2299 }
 0x1e3   : > { %v2350_v24 = vrot.slane %v2300_v20, 1 }
 0x1e5   : > { %v2351_v25 = vsel %vm2336_vm9, %v2350_v24, %v2349_v17 }
 0x1e6   : > { %v2355_v27 = vadd.f32 %v2351_v25, %v2235_v22  ;;  %v2363_v22 = vld [vmem:[#allocation3] sm:$0xff] (!%p3145_p13)  ;;  %v2489_v25 = vld [vmem:[#allocation8] sm:$0xff] (!%p3145_p13) }
 0x1e8   : > { %2358 = vst.msk [vmem:[#allocation3 + $0x8] sm:$0xff] %vm2356_vm10, %v2355_v27  ;;  %v4225_v27 = vmov (!%p3145_p13), 0  }
 0x1e9   : > { %3980 = vset.pattern.permute.xlu0 (!%p3145_p13), %v4225_v27 }
 0x1ef   : > { %v2364_v24 = vld [vmem:[#allocation3 + $0x8] sm:$0xff] (!%p3145_p13) }
 0x1fa   : > { %v1228_v44 = vpop.f32.mrb[8].mxu0 }
 0x1fb   : > { %v2206_v47 = vadd.f32 %v1228_v44, %v782_v39  ;;  %v1316_v48 = vpop.f32.mrb[8].mxu1  ;;  %v3418_v49 = vpop.f32.mrb[9].mxu0 }
 0x1fc   : > { %v2207_v52 = vadd.f32 %v1316_v48, %v783_v42  ;;  %v3438_v54 = vpop.f32.mrb[9].mxu1  ;;  %v1231_v55 = vpop.f32.mrb[10].mxu0  ;;  %v788_v49 = vld [vmem:[#allocation2 + $0xa] sm:$0x1] }
 0x1fd   : > { %2222 = vst [vmem:[#allocation2 + $0x4] sm:$0x1] %v2206_v47  ;;  %v1319_v56 = vpop.f32.mrb[10].mxu1  ;;  %v3419_v57 = vpop.f32.mrb[11].mxu0 }
 0x1fe   : > { %2223 = vst [vmem:[#allocation2 + $0x5] sm:$0x1] %v2207_v52  ;;  %v3439_v59 = vpop.f32.mrb[11].mxu1 }
 0x21a   : > { %v1404_v29 = vpop.f32.mrb[12].mxu0 }
 0x21b   : > { %v2208_v18 = vadd.f32 %v1404_v29, %v784_v28  ;;  %v1492_v30 = vpop.f32.mrb[12].mxu1  ;;  %v3458_v31 = vpop.f32.mrb[13].mxu0  ;;  %v2365_v28 = vmax.f32 (!%p3145_p13), %v2363_v22, 1e-06  ;;  %v2490_v29 = vld [vmem:[#allocation8 + $0x8] sm:$0xff] (!%p3145_p13) }
 0x21c   : > { %v2209_v32 = vadd.f32 %v1492_v30, %v785_v26  ;;  %v3478_v15 = vpop.f32.mrb[13].mxu1  ;;  %v1407_v33 = vpop.f32.mrb[14].mxu0  ;;  %v2366_v26 = vmax.f32 (!%p3145_p13), %v2364_v24, 1e-06  ;;  %v3675_v30 = vpack.c.bf16 (!%p3145_p13), %v2490_v29, %v2489_v25  ;;  %v2492_v31 = vld [vmem:[#allocation8 + $0x18] sm:$0xff] (!%p3145_p13) }
 0x21d   : > { %2224 = vst [vmem:[#allocation2 + $0x6] sm:$0x1] %v2208_v18  ;;  %v1495_v23 = vpop.f32.mrb[14].mxu1  ;;  %v3459_v35 = vpop.f32.mrb[15].mxu0  ;;  %v2491_v18 = vld [vmem:[#allocation8 + $0x10] sm:$0xff] (!%p3145_p13)  ;;  %3981 = vrcp.f32 (!%p3145_p13), %v2365_v28  ;;  %v2493_v15 = vld [vmem:[#allocation8 + $0x20] sm:$0xff] (!%p3145_p13) }
 0x21e   : > { %2225 = vst [vmem:[#allocation2 + $0x7] sm:$0x1] %v2209_v32  ;;  %v3479_v36 = vpop.f32.mrb[15].mxu1  ;;  %v3679_v32 = vpack.c.bf16 (!%p3145_p13), %v2492_v31, %v2491_v18  ;;  %v2494_v33 = vld [vmem:[#allocation8 + $0x28] sm:$0xff] (!%p3145_p13)  ;;  %3676 = vmatprep.subr.bf16.mxu0 (!%p3145_p13), %v3675_v30  ;;  %3983 = vrcp.f32 (!%p3145_p13), %v2366_v26  ;;  %v2495_v35 = vld [vmem:[#allocation8 + $0x30] sm:$0xff] (!%p3145_p13) }
 0x21f   : > { %3678 = vmatpush3.bf16.msra.mxu0 (!%p3145_p13), %v3675_v30  ;;  %v3683_v23 = vpack.c.bf16 (!%p3145_p13), %v2494_v33, %v2493_v15  ;;  %v2496_v36 = vld [vmem:[#allocation8 + $0x38] sm:$0xff] (!%p3145_p13) }
 0x220   : > { %3680 = vmatprep.subr.bf16.mxu0 (!%p3145_p13), %v3679_v32 }
 0x223   : > { %3682 = vmatpush3.bf16.msra.mxu0 (!%p3145_p13), %v3679_v32 }
 0x224   : > { %3684 = vmatprep.subr.bf16.mxu0 (!%p3145_p13), %v3683_v23 }
 0x227   : > { %3686 = vmatpush3.bf16.msra.mxu0 (!%p3145_p13), %v3683_v23 }
 0x23a   : > { %v1580_v39 = vpop.f32.mrb[16].mxu0 }
 0x23b   : > { %v2210_v40 = vadd.f32 %v1580_v39, %v786_v37  ;;  %v1668_v41 = vpop.f32.mrb[16].mxu1  ;;  %v3498_v42 = vpop.f32.mrb[17].mxu0  ;;  %v3687_v37 = vpack.c.bf16 (!%p3145_p13), %v2496_v36, %v2495_v35  ;;  %v2497_v39 = vld [vmem:[#allocation8 + $0x40] sm:$0xff] (!%p3145_p13) }
 0x23c   : > { %v2211_v43 = vadd.f32 %v1668_v41, %v787_v38  ;;  %v3518_v44 = vpop.f32.mrb[17].mxu1  ;;  %v1583_v45 = vpop.f32.mrb[18].mxu0 }
 0x23d   : > { %2226 = vst [vmem:[#allocation2 + $0x8] sm:$0x1] %v2210_v40  ;;  %v1671_v46 = vpop.f32.mrb[18].mxu1  ;;  %v3499_v47 = vpop.f32.mrb[19].mxu0  ;;  %v2498_v40 = vld [vmem:[#allocation8 + $0x48] sm:$0xff] (!%p3145_p13)  ;;  %3688 = vmatprep.subr.bf16.mxu0 (!%p3145_p13), %v3687_v37  ;;  %v2500_v44 = vld [vmem:[#allocation8 + $0x58] sm:$0xff] (!%p3145_p13) }
 0x23e   : > { %2227 = vst [vmem:[#allocation2 + $0x9] sm:$0x1] %v2211_v43  ;;  %v3519_v48 = vpop.f32.mrb[19].mxu1  ;;  %v3982_v38 = vpop.eup (!%p3145_p13), %3981  ;;  %v3691_v41 = vpack.c.bf16 (!%p3145_p13), %v2498_v40, %v2497_v39  ;;  %3690 = vmatpush3.bf16.msra.mxu0 (!%p3145_p13), %v3687_v37  ;;  %v2499_v43 = vld [vmem:[#allocation8 + $0x50] sm:$0xff] (!%p3145_p13)  ;;  %v2501_v46 = vld [vmem:[#allocation8 + $0x60] sm:$0xff] (!%p3145_p13)  ;;  %v2502_v47 = vld [vmem:[#allocation8 + $0x68] sm:$0xff] (!%p3145_p13) }
 0x23f   : > { %2387 = vperm.xlu0 (!%p3145_p13), %3980, %v3982_v38   ;;  %v3984_v42 = vpop.eup (!%p3145_p13), %3983  ;;  %v3695_v45 = vpack.c.bf16 (!%p3145_p13), %v2500_v44, %v2499_v43  ;;  %v3699_v48 = vpack.c.bf16 (!%p3145_p13), %v2502_v47, %v2501_v46 }
 0x240   : > { %3692 = vmatprep.subr.bf16.mxu0 (!%p3145_p13), %v3691_v41 }
 0x242   : > { %3694 = vmatpush3.bf16.msra.mxu0 (!%p3145_p13), %v3691_v41 }
 0x243   : > { %2391 = vperm.xlu0 (!%p3145_p13), %3980, %v3984_v42   ;;  %3696 = vmatprep.subr.bf16.mxu0 (!%p3145_p13), %v3695_v45 }
 0x244   : > { %v2377_v23 = vld [vmem:[#allocation2 + $0x8] sm:$0x1] (!%p3145_p13) }
 0x245   : > { %v2378_v35 = vld [vmem:[#allocation2 + $0x9] sm:$0x1] (!%p3145_p13) }
 0x246   : > { %3698 = vmatpush3.bf16.msra.mxu0 (!%p3145_p13), %v3695_v45 }
 0x247   : > { %3700 = vmatprep.subr.bf16.mxu0 (!%p3145_p13), %v3699_v48 }
 0x24a   : > { %3702 = vmatpush3.bf16.msra.mxu0 (!%p3145_p13), %v3699_v48 }
 0x25a   : > { %v1756_v51 = vpop.f32.mrb[20].mxu0 }
 0x25b   : > { %v2212_v52 = vadd.f32 %v1756_v51, %v788_v49  ;;  %v1844_v54 = vpop.f32.mrb[20].mxu1  ;;  %v3538_v55 = vpop.f32.mrb[21].mxu0  ;;  %v2503_v49 = vld [vmem:[#allocation8 + $0x70] sm:$0xff] (!%p3145_p13) }
 0x25c   : > { %v2213_v56 = vadd.f32 %v1844_v54, %v789_v50  ;;  %v3558_v57 = vpop.f32.mrb[21].mxu1  ;;  %v1759_v58 = vpop.f32.mrb[22].mxu0  ;;  %v2504_v50 = vld [vmem:[#allocation8 + $0x78] sm:$0xff] (!%p3145_p13)  ;;  %v4226_v54 = vmov (!%p3145_p13), 1966171168  }
 0x25d   : > { %2228 = vst [vmem:[#allocation2 + $0xa] sm:$0x1] %v2212_v52  ;;  %v1847_v34 = vpop.f32.mrb[22].mxu1  ;;  %v3539_v59 = vpop.f32.mrb[23].mxu0  ;;  %v3703_v51 = vpack.c.bf16 (!%p3145_p13), %v2504_v50, %v2503_v49  ;;  %v2393_v52 = vlaneseq (!%p3145_p13)  ;;  %v2533_v55 = vunpack.c.l.s4 (!%p3145_p13), %v4226_v54 }
 0x25e   : > { %2229 = vst [vmem:[#allocation2 + $0xb] sm:$0x1] %v2213_v56  ;;  %v3559_v53 = vpop.f32.mrb[23].mxu1 }
 0x25f   : > { %3704 = vmatprep.subr.bf16.mxu0 (!%p3145_p13), %v3703_v51  ;;  %v2394_v56 = vshrl.u32 (!%p3145_p13), %v2393_v52, 7  ;;  %v2534_v57 = vunpack.c.0.s8 (!%p3145_p13), %v2533_v55 }
 0x260   : > { %3706 = vmatpush3.bf16.msra.mxu0 (!%p3145_p13), %v3703_v51 }
 0x261   : > { %v2395_v58 = vsub.s32 (!%p3145_p13), 0, %v2394_v56  ;;  %v2399_v34 = vsub.s32 (!%p3145_p13), 1, %v2394_v56  ;;  %v2403_v59 = vsub.s32 (!%p3145_p13), 2, %v2394_v56  ;;  %v2407_v53 = vsub.s32 (!%p3145_p13), 3, %v2394_v56 }
 0x264   : > { %v2379_v36 = vld [vmem:[#allocation2 + $0xa] sm:$0x1] (!%p3145_p13) }
 0x265   : > { %v2380_v41 = vld [vmem:[#allocation2 + $0xb] sm:$0x1] (!%p3145_p13) }
 0x27a   : > { %v1932_v62 = vpop.f32.mrb[24].mxu0 }
 0x27b   : > { %v2214_v63 = vadd.f32 %v1932_v62, %v790_v60  ;;  %v2020_v0 = vpop.f32.mrb[24].mxu1  ;;  %v3578_v1 = vpop.f32.mrb[25].mxu0  ;;  %v2411_v60 = vsub.s32 (!%p3145_p13), 4, %v2394_v56  ;;  %v2419_v62 = vsub.s32 (!%p3145_p13), 6, %v2394_v56 }
 0x27c   : > { %v2215_v2 = vadd.f32 %v2020_v0, %v791_v61  ;;  %v3598_v3 = vpop.f32.mrb[25].mxu1  ;;  %v1935_v4 = vpop.f32.mrb[26].mxu0  ;;  %v2415_v61 = vsub.s32 (!%p3145_p13), 5, %v2394_v56  ;;  %v2369_v0 = vld [vmem:[#allocation2] sm:$0x1] (!%p3145_p13) }
 0x27d   : > { %2230 = vst [vmem:[#allocation2 + $0xc] sm:$0x1] %v2214_v63  ;;  %v2023_v5 = vpop.f32.mrb[26].mxu1  ;;  %v3579_v6 = vpop.f32.mrb[27].mxu0  ;;  %v2423_v63 = vsub.s32 (!%p3145_p13), 7, %v2394_v56 }
 0x27e   : > { %2231 = vst [vmem:[#allocation2 + $0xd] sm:$0x1] %v2215_v2  ;;  %v3599_v8 = vpop.f32.mrb[27].mxu1  ;;  %v2370_v1 = vld [vmem:[#allocation2 + $0x1] sm:$0x1] (!%p3145_p13)  ;;  %v4956_v6 = vsub.s32 (!%p3145_p13), %v2534_v57, %v2394_v56 }
 0x27f   : > { %v2371_v3 = vld [vmem:[#allocation2 + $0x2] sm:$0x1] (!%p3145_p13)  ;;  %v2372_v4 = vld [vmem:[#allocation2 + $0x3] sm:$0x1] (!%p3145_p13)  ;;  %v2373_v5 = vld [vmem:[#allocation2 + $0x4] sm:$0x1] (!%p3145_p13) }
 0x280   : > { %v2374_v8 = vld [vmem:[#allocation2 + $0x5] sm:$0x1] (!%p3145_p13) }
 0x284   : > { %v2381_v42 = vld [vmem:[#allocation2 + $0xc] sm:$0x1] (!%p3145_p13) }
 0x285   : > { %v2382_v43 = vld [vmem:[#allocation2 + $0xd] sm:$0x1] (!%p3145_p13) }
 0x298   : > { %2362 = sbr.rel (%p3145_p13) target bundleno = 1718 (0x6b6), region = 105 }
 0x29a   : > { %v2108_v11 = vpop.f32.mrb[28].mxu0 }
 0x29b   : > { %v2216_v7 = vadd.f32 %v2108_v11, %v792_v9  ;;  %v2196_v12 = vpop.f32.mrb[28].mxu1  ;;  %v3618_v13 = vpop.f32.mrb[29].mxu0  ;;  %v2375_v9 = vld [vmem:[#allocation2 + $0x6] sm:$0x1] (!%p3145_p13) }
 0x29c   : > { %v2217_v14 = vadd.f32 %v2196_v12, %v793_v10  ;;  %v3638_v16 = vpop.f32.mrb[29].mxu1  ;;  %v2111_v17 = vpop.f32.mrb[30].mxu0  ;;  %v2376_v10 = vld [vmem:[#allocation2 + $0x7] sm:$0x1] (!%p3145_p13) }
 0x29d   : > { %2232 = vst [vmem:[#allocation2 + $0xe] sm:$0x1] %v2216_v7  ;;  %v2199_v19 = vpop.f32.mrb[30].mxu1  ;;  %v3619_v20 = vpop.f32.mrb[31].mxu0 }
 0x29e   : > { %2233 = vst [vmem:[#allocation2 + $0xf] sm:$0x1] %v2217_v14  ;;  %v3639_v21 = vpop.f32.mrb[31].mxu1 }
 0x2a4   : > { %v2383_v48 = vld [vmem:[#allocation2 + $0xe] sm:$0x1] }
 0x2a5   : > { %v2384_v49 = vld [vmem:[#allocation2 + $0xf] sm:$0x1] }
 0x2be   : > { %v2388_v2 = vpop.permute.xlu0 %2387 }
 0x2bf   : > { %v2396_v11 = vrot.slane %v2388_v2, %v2395_v58  ;;  %v2400_v7 = vrot.slane %v2388_v2, %v2399_v34  ;;  %v2404_v12 = vrot.slane %v2388_v2, %v2403_v59  ;;  %v2408_v13 = vrot.slane %v2388_v2, %v2407_v53 }
 0x2c0   : > { %v2412_v14 = vrot.slane %v2388_v2, %v2411_v60  ;;  %v2416_v16 = vrot.slane %v2388_v2, %v2415_v61  ;;  %v2420_v17 = vrot.slane %v2388_v2, %v2419_v62  ;;  %v2424_v19 = vrot.slane %v2388_v2, %v2423_v63 }
 0x2c1   : > { %v2473_v20 = vmul.f32 %v2396_v11, %v2369_v0  ;;  %v2474_v21 = vmul.f32 %v2400_v7, %v2370_v1  ;;  %v2475_v22 = vmul.f32 %v2404_v12, %v2371_v3  ;;  %v2476_v24 = vmul.f32 %v2408_v13, %v2372_v4 }
 0x2c2   : > { %v2392_v25 = vpop.permute.xlu0 %2391  ;;  %v2477_v27 = vmul.f32 %v2412_v14, %v2373_v5  ;;  %v2478_v28 = vmul.f32 %v2416_v16, %v2374_v8  ;;  %v2479_v26 = vmul.f32 %v2420_v17, %v2375_v9  ;;  %v2480_v29 = vmul.f32 %v2424_v19, %v2376_v10  ;;  %v3146_v16 = vld [vmem:[#allocation10] ss:$0 sm:$0xff] }
 0x2c3   : > { %v2528_v18 = vcombine.low %v2473_v20, %v2474_v21  ;;  %v2529_v30 = vcombine.low %v2475_v22, %v2476_v24  ;;  %v2428_v31 = vrot.slane %v2392_v25, %v2395_v58  ;;  %v2432_v32 = vrot.slane %v2392_v25, %v2399_v34 }
 0x2c4   : > { %v2530_v15 = vcombine.low %v2477_v27, %v2478_v28  ;;  %v2531_v33 = vcombine.low %v2479_v26, %v2480_v29  ;;  %v2436_v37 = vrot.slane %v2392_v25, %v2403_v59  ;;  %v2440_v38 = vrot.slane %v2392_v25, %v2407_v53 }
 0x2c5   : > { %v2538_v39 = vrot.slane %v2528_v18, %v4956_v6  ;;  %v2545_v40 = vrot.slane %v2529_v30, %v4956_v6  ;;  %v2444_v44 = vrot.slane %v2392_v25, %v2411_v60  ;;  %v2448_v45 = vrot.slane %v2392_v25, %v2415_v61 }
 0x2c6   : > { %v2552_v46 = vrot.slane %v2530_v15, %v4956_v6  ;;  %v2559_v47 = vrot.slane %v2531_v33, %v4956_v6  ;;  %v2452_v50 = vrot.slane %v2392_v25, %v2419_v62  ;;  %v2456_v51 = vrot.slane %v2392_v25, %v2423_v63 }
 0x2c7   : > { %v2560_v54 = vcombine.low %v2538_v39, %v2545_v40  ;;  %v2481_v55 = vmul.f32 %v2428_v31, %v2377_v23  ;;  %v2482_v56 = vmul.f32 %v2432_v32, %v2378_v35  ;;  %v2483_v57 = vmul.f32 %v2436_v37, %v2379_v36  ;;  %v2735_v23 = vld [vmem:[%s4561_s30 + $0x8] sm:$0xff] }
 0x2c8   : > { %v2561_v58 = vcombine.low %v2552_v46, %v2559_v47  ;;  %v2484_v34 = vmul.f32 %v2440_v38, %v2380_v41  ;;  %v2485_v59 = vmul.f32 %v2444_v44, %v2381_v42  ;;  %v2486_v53 = vmul.f32 %v2448_v45, %v2382_v43 }
 0x2c9   : > { %v2568_v0 = vrot.slane %v2560_v54, %v4956_v6  ;;  %v2487_v60 = vmul.f32 %v2452_v50, %v2383_v48  ;;  %v2488_v61 = vmul.f32 %v2456_v51, %v2384_v49  ;;  %v2577_v1 = vcombine.low %v2481_v55, %v2482_v56 }
 0x2ca   : > { %v2575_v2 = vrot.slane %v2561_v58, %v4956_v6  ;;  %v2578_v3 = vcombine.low %v2483_v57, %v2484_v34  ;;  %v2579_v4 = vcombine.low %v2485_v59, %v2486_v53  ;;  %v4971_v17 = vand.u32 127, %v2393_v52  ;;  %v2734_v34 = vld [vmem:[%s4561_s30] sm:$0xff] }
 0x2cb   : > { %v2580_v5 = vcombine.low %v2487_v60, %v2488_v61  ;;  %v2587_v62 = vrot.slane %v2577_v1, %v4956_v6 }
 0x2cc   : > { %v2576_v63 = vcombine.low %v2568_v0, %v2575_v2  ;;  %v2594_v8 = vrot.slane %v2578_v3, %v4956_v6  ;;  %v2601_v9 = vrot.slane %v2579_v4, %v4956_v6  ;;  %vm2707_vm11 = vcmp.lt.s32.totalorder %v4971_v17, 4 }
 0x2cd   : > { %v2608_v10 = vrot.slane %v2580_v5, %v4956_v6  ;;  %v2796_v53 = vcvt.s32.f32 %v4971_v17  ;;  %vm2816_vm0 = vcmp.eq.s32.totalorder %v4971_v17, 1  ;;  %vm2813_vm1 = vcmp.eq.s32.totalorder %v4971_v17, 0 }
 0x2ce   : > { %3672 = vmatprep.mubr.f32.mxu0 %v2576_v63  ;;  %v2609_v11 = vcombine.low %v2587_v62, %v2594_v8  ;;  %vm2821_vm3 = vcmp.eq.s32.totalorder %v4971_v17, 2 }
 0x2cf   : > { %v2610_v7 = vcombine.low %v2601_v9, %v2608_v10  ;;  %v2798_v0 = vmul.f32 %v2796_v53, %v2735_v23  ;;  %v2797_v10 = vmul.f32 %v2796_v53, %v2734_v34 }
 0x2d0   : > { %v2617_v12 = vrot.slane %v2609_v11, %v4956_v6 }
 0x2d1   : > { %v2624_v13 = vrot.slane %v2610_v7, %v4956_v6 }
 0x2d3   : > { %v2625_v14 = vcombine.low %v2617_v12, %v2624_v13 }
 0x2d5   : > { %3673 = vmatmul.mubr.f32.vlgmr.msra.gmra.mrb[0].mxu0 %v2625_v14 }
 0x3a8   : > { %v3674_v19 = vpop.f32.mrb[0].mxu0 }
 0x3a9   : > { %v2694_v20 = vpop.f32.mrb[1].mxu0  ;;  %v2700_v21 = vadd.f32 %v3674_v19, %v3146_v16 }
 0x3aa   : > { %v2695_v22 = vadd.f32 %v3146_v16, %v2694_v20 }
 0x3ab   : > { %v2704_v25 = vmax.f32 %v2700_v21, 0.0 }
 0x3ac   : > { %v2703_v24 = vmax.f32 %v2695_v22, 0.0 }
 0x3ad   : > { %v2709_v6 = vsel %vm2707_vm11, %v2704_v25, -1e+30 }
 0x3ae   : > { %v2708_v27 = vsel %vm2707_vm11, %v2703_v24, -1e+30 }
 0x3af   : > { %2710 = vmax.xlane.f32.xlu1 %v2708_v27 }
 0x3b3   : > { %2712 = vmax.xlane.f32.xlu1 %v2709_v6 }
 0x43c   : > { %v2711_v28 = vpop.xlane.xlu1 %2710 }
 0x43d   : > { %v2714_v52 = vsub.f32 %v2708_v27, %v2711_v28 }
 0x43f   : > { %v2716_v26 = vmul.f32 1.442695, %v2714_v52 }
 0x440   : > { %v2713_v29 = vpop.xlane.xlu1 %2712 }
 0x441   : > { %3985 = vpow2.f32 %v2716_v26  ;;  %v2715_v18 = vsub.f32 %v2709_v6, %v2713_v29 }
 0x443   : > { %v2718_v30 = vmul.f32 1.442695, %v2715_v18 }
 0x445   : > { %3987 = vpow2.f32 %v2718_v30 }
 0x44b   : > { %v3986_v31 = vpop.eup %3985 }
 0x44c   : > { %v2720_v32 = vsel %vm2707_vm11, %v3986_v31, 0.0  ;;  %v4227_v31 = vmov 0.0  }
 0x44d   : > { %2722 = vadd.xlane.f32.xlu0 %v2720_v32 }
 0x44f   : > { %v3988_v15 = vpop.eup %3987 }
 0x450   : > { %v2721_v33 = vsel %vm2707_vm11, %v3988_v15, 0.0 }
 0x451   : > { %2724 = vadd.xlane.f32.xlu1 %v2721_v33  ;;  %2738 = vadd.xlane.f32.xlu0 %v2735_v23 }
 0x4da   : > { %v2723_v35 = vpop.xlane.xlu0 %2722 }
 0x4db   : > { %3989 = vlog2.f32 %v2723_v35 }
 0x4de   : > { %v2725_v36 = vpop.xlane.xlu1 %2724  ;;  %v2739_v11 = vpop.xlane.xlu0 %2738 }
 0x4df   : > { %3991 = vlog2.f32 %v2725_v36 }
 0x4e5   : > { %v3990_v37 = vpop.eup %3989 }
 0x4e6   : > { %v2727_v38 = vmul.f32 0.6931472, %v3990_v37 }
 0x4e8   : > { %v2730_v39 = vadd.f32 %v2727_v38, %v2711_v28 }
 0x4e9   : > { %v3992_v40 = vpop.eup %3991 }
 0x4ea   : > { %v2732_v41 = vsub.f32 %v2708_v27, %v2730_v39  ;;  %v2729_v42 = vmul.f32 0.6931472, %v3992_v40 }
 0x4ec   : > { %v2731_v43 = vadd.f32 %v2729_v42, %v2713_v29  ;;  %2760 = vmax.xlane.f32.xlu1 %v2732_v41  ;;  %v2740_v59 = vmul.f32 %v2734_v34, %v2732_v41  ;;  %v2748_v5 = vsub.f32 -1.3862944, %v2732_v41 }
 0x4ee   : > { %v2733_v44 = vsub.f32 %v2709_v6, %v2731_v43  ;;  %v2750_v8 = vmul.f32 0.25, %v2748_v5 }
 0x4f0   : > { %2762 = vmax.xlane.f32.xlu1 %v2733_v44  ;;  %v2741_v45 = vmul.f32 %v2735_v23, %v2733_v44  ;;  %v2749_v46 = vsub.f32 -1.3862944, %v2733_v44  ;;  %v2752_v9 = vsel %vm2707_vm11, %v2750_v8, 0.0 }
 0x4f2   : > { %2744 = vadd.xlane.f32.xlu0 %v2741_v45  ;;  %v2751_v47 = vmul.f32 0.25, %v2749_v46 }
 0x4f4   : > { %v2753_v48 = vsel %vm2707_vm11, %v2751_v47, 0.0 }
 0x4f6   : > { %2756 = vadd.xlane.f32.xlu0 %v2753_v48 }
 0x4fa   : > { %2801 = vadd.xlane.f32.xlu0 %v2798_v0 }
 0x579   : > { %v2761_v49 = vpop.xlane.xlu1 %2760 }
 0x57a   : > { %vm2764_vm12 = vcmp.ge.f32.partialorder %v2732_v41, %v2761_v49 }
 0x57b   : > { %v2766_v50 = vsel %vm2764_vm12, %v4971_v17, 128 }
 0x57c   : > { %v2769_v51 = vshra.s32 %v2766_v50, 16  ;;  %v2768_v1 = vand.u32 65535, %v2766_v50 }
 0x57d   : > { %v2763_v54 = vpop.xlane.xlu1 %2762 }
 0x57e   : > { %vm2765_vm13 = vcmp.ge.f32.partialorder %v2733_v44, %v2763_v54  ;;  %v2771_v55 = vcvt.s32.f32 %v2769_v51  ;;  %v2770_v62 = vcvt.s32.f32 %v2768_v1 }
 0x57f   : > { %v2767_v56 = vsel %vm2765_vm13, %v4971_v17, 128  ;;  %v2745_v12 = vpop.xlane.xlu0 %2744 }
 0x580   : > { %2772 = vmin.xlane.f32.xlu1 %v2771_v55  ;;  %v2783_v57 = vshra.s32 %v2767_v56, 16  ;;  %v2782_v60 = vand.u32 65535, %v2767_v56  ;;  %v2747_v27 = vsub.f32 0.0, %v2745_v12 }
 0x582   : > { %v2785_v58 = vcvt.s32.f32 %v2783_v57  ;;  %v2784_v3 = vcvt.s32.f32 %v2782_v60  ;;  %v2815_v33 = vsel %vm2813_vm1, %v2747_v27, 0.0 }
 0x583   : > { %v2757_v16 = vpop.xlane.xlu0 %2756 }
 0x584   : > { %2786 = vmin.xlane.f32.xlu1 %v2785_v58  ;;  %v2759_v24 = vmul.f32 %v2757_v16, %v2739_v11 }
 0x586   : > { %v2818_v18 = vsel %vm2816_vm0, %v2759_v24, 0.0 }
 0x587   : > { %v2802_v28 = vpop.xlane.xlu0 %2801  ;;  %v2820_v36 = vadd.f32 %v2818_v18, %v2815_v33 }
 0x588   : > { %2736 = vadd.xlane.f32.xlu1 %v2734_v34 }
 0x58c   : > { %2742 = vadd.xlane.f32.xlu1 %v2740_v59 }
 0x60d   : > { %v2773_v61 = vpop.xlane.xlu1 %2772 }
 0x60e   : > { %vm2774_vm15 = vcmp.eq.f32.partialorder %v2771_v55, %v2773_v61  ;;  %v2779_v20 = vcvt.f32.s32 %v2773_v61 }
 0x60f   : > { %v2775_v63 = vsel %vm2774_vm15, %v2770_v62, inf }
 0x610   : > { %v2780_v52 = vshll.u32 %v2779_v20, 16 }
 0x611   : > { %v2787_v2 = vpop.xlane.xlu1 %2786 }
 0x612   : > { %vm2788_vm14 = vcmp.eq.f32.partialorder %v2785_v58, %v2787_v2  ;;  %v2793_v14 = vcvt.f32.s32 %v2787_v2 }
 0x613   : > { %v2789_v4 = vsel %vm2788_vm14, %v2784_v3, inf }
 0x614   : > { %2790 = vmin.xlane.f32.xlu1 %v2789_v4  ;;  %v2794_v21 = vshll.u32 %v2793_v14, 16 }
 0x615   : > { %v2737_v7 = vpop.xlane.xlu1 %2736 }
 0x618   : > { %2776 = vmin.xlane.f32.xlu1 %v2775_v63 }
 0x619   : > { %v2743_v13 = vpop.xlane.xlu1 %2742 }
 0x61a   : > { %v2746_v37 = vsub.f32 0.0, %v2743_v13 }
 0x61c   : > { %2754 = vadd.xlane.f32.xlu1 %v2752_v9  ;;  %v2814_v44 = vsel %vm2813_vm1, %v2746_v37, 0.0 }
 0x620   : > { %2799 = vadd.xlane.f32.xlu1 %v2797_v10 }
 0x6a1   : > { %v2791_v19 = vpop.xlane.xlu1 %2790 }
 0x6a2   : > { %v2792_v22 = vcvt.f32.s32 %v2791_v19 }
 0x6a4   : > { %v2795_v25 = vadd.s32 %v2794_v21, %v2792_v22 }
 0x6a5   : > { %v2777_v6 = vpop.xlane.xlu1 %2776 }
 0x6a6   : > { %v2778_v26 = vcvt.f32.s32 %v2777_v6  ;;  %v2804_v29 = vcvt.s32.f32 %v2795_v25 }
 0x6a8   : > { %v2781_v30 = vadd.s32 %v2780_v52, %v2778_v26  ;;  %vm2806_vm2 = vcmp.eq.f32.partialorder %v2804_v29, %v2802_v28 }
 0x6a9   : > { %v3148_v32 = vsel %vm2806_vm2, 1.0, %v4227_v31  ;;  %v2755_v15 = vpop.xlane.xlu1 %2754 }
 0x6aa   : > { %v2812_v23 = vmul.f32 %v3148_v32, %v2739_v11  ;;  %v2758_v35 = vmul.f32 %v2755_v15, %v2737_v7  ;;  %v2803_v39 = vcvt.s32.f32 %v2781_v30 }
 0x6ac   : > { %v2823_v38 = vsel %vm2821_vm3, %v2812_v23, 0.0  ;;  %v2817_v42 = vsel %vm2816_vm0, %v2758_v35, 0.0 }
 0x6ad   : > { %v2825_v40 = vadd.f32 %v2823_v38, %v2820_v36  ;;  %v2800_v41 = vpop.xlane.xlu1 %2799  ;;  %v2819_v46 = vadd.f32 %v2817_v42, %v2814_v44 }
 0x6ae   : > { %vm2805_vm4 = vcmp.eq.f32.partialorder %v2803_v39, %v2800_v41 }
 0x6af   : > { %2827 = vst [vmem:[%s4567_s13 + $0x8] sm:$0xff] %v2825_v40  ;;  %v3147_v43 = vsel %vm2805_vm4, 1.0, %v4227_v31 }
 0x6b0   : > { %v2811_v45 = vmul.f32 %v3147_v43, %v2737_v7 }
 0x6b2   : > { %v2822_v47 = vsel %vm2821_vm3, %v2811_v45, 0.0 }
 0x6b3   : > { %v2824_v48 = vadd.f32 %v2822_v47, %v2819_v46 }
 0x6b5   : > { %2826 = vst [vmem:[%s4567_s13] sm:$0xff] %v2824_v48 }
 0x6b6 PF: > { %s5132_s10 = sld [smem:[#allocation23_spill]]  ;;  %s5133_s18 = sld [smem:[#allocation29_spill]] }
 0x6b7   : > { %s5134_s21 = sld [smem:[#allocation32_spill]]  ;;  %s2842_s25 = sshll.u32 %s4567_s13, 4  ;;  %s5015_s25 = int_to_ptr.vmem [resolvable:$true] %s2842_s25 }
 0x6b8   : > { %s2829_s17 = scalar_lea.sflag [#allocation6], %s4557_s7  ;;  %s4077_s12 = scalar_lea.vmem %s5015_s25, 256 }
 0x6b9   : > { %p4078_p1 = scmp.ne.s32.totalorder %s5015_s25, %s4077_s12  ;;  %s4228_s16 = smov [#allocation13]  }
 0x6ba   : > { %s4081_s8 = sshll.u32 %s4228_s16, 4  ;;  %s4082_s8 = int_to_ptr.vmem [resolvable:$false] %s4081_s8 }
 0x6bb   : > { %s4083_s15 = scalar_lea.vmem %s4082_s8, 512  ;;  %p4084_p8 = scmp.lt.s32.totalorder %s5015_s25, %s4082_s8 }
 0x6bc   : > { %s3157_s9 = sshll.u32 %s5132_s10, 8  ;;  %p5136_p4 = scmp.ne.s32.totalorder %s5133_s18, 0 }
 0x6bd   : > { %s5135_s14 = smov %s5134_s21  ;;  %s5012_s24 = scalar_lea.hbm %s5134_s21, %s3157_s9 }
 0x6be   : > { %p4079_p2 = pnand %p4078_p1, %p5136_p4  ;;  %p4085_p0 = scmp.lt.s32.totalorder %s4083_s15, %s4077_s12 }
 0x6c0   : > { %p4080_p5 = pneg %p4079_p2  ;;  %p4086_p6 = por %p4085_p0, %p4084_p8 }
 0x6c2   : > { %p4087_p12 = pnand %p4086_p6, %p4080_p5 }
 0x6c4   : > { %4090 = shalt.err (!%p4087_p12)
}
 0x6c5   : > { %s4091_s0 = scalar_lea.hbm %s5012_s24, 256  ;;  %s4095_s6 = scalar_lea.hbm %s5135_s14, 512 }
 0x6c6   : > { %p4092_p7 = scmp.ne.s32.totalorder %s5012_s24, %s4091_s0  ;;  %p4096_p11 = scmp.lt.u32.totalorder %s5012_s24, %s5135_s14 }
 0x6c7   : > { %p4097_p9 = scmp.lt.u32.totalorder %s4095_s6, %s4091_s0  ;;  %p4099_p1 = scmp.lt.u32.totalorder %s4091_s0, %s5012_s24 }
 0x6c8   : > { %p4093_p10 = pnand %p4092_p7, %p5136_p4 }
 0x6c9   : > { %p4098_p13 = por %p4097_p9, %p4096_p11 }
 0x6ca   : > { %p4094_p3 = pneg %p4093_p10 }
 0x6cb   : > { %p4100_p2 = por %p4099_p1, %p4098_p13 }
 0x6cd   : > { %p4101_p5 = pnand %p4100_p2, %p4094_p3 }
 0x6cf   : > { %4104 = shalt.err (!%p4101_p5)
}
 0x6d0   : > { %s4229_s9 = smov 128   ;;  %s4230_s29 = smov 8  }
 0x6d1   : > { %3726 = dma.vmem_to_hbm [thread:$0]  (%p5136_p4), %s5015_s25, 256, %s5012_s24, %s2829_s17, %s4229_s9, %s4229_s9, %s4230_s29  }
 0x6d2 PF: > { %s5137_s5 = sld [smem:[#allocation21_spill]]  ;;  %s5138_s21 = sld [smem:[#allocation30_spill]] }
 0x6d3   : > { %p3743_p8 = scmp.ge.s32.totalorder %s4207_s28, 2 }
 0x6d8   : > { %s2857_s12 = sand.u32 1, %s5137_s5   ;;  %p5139_p0 = scmp.ne.s32.totalorder %s5138_s21, 0 }
 0x6d9   : > { %s2858_s16 = scalar_lea.sflag [#allocation6], %s2857_s12 }
 0x6da   : > { %p3736_p6 = pnand %p3743_p8, %p5139_p0 }
 0x6dc   : > { %4162 = dma.done.wait (!%p3736_p6), %s2858_s16, 256  }
 0x6dd   : > { %4164 = vsyncadd (!%p3736_p6), %s2858_s16, 4294967040  ;;  %s25_s28 = sadd.s32 1, %s4207_s28   ;;  %s5140_s8 = sld [smem:[#allocation26_spill]] }
 0x6de   : > { %p22_p12 = scmp.ge.s32.totalorder %s25_s28, 6   ;;  %s5141_s7 = sld [smem:[#allocation27_spill]] }
 0x6df   : > { %s5142_s17 = sld [smem:[#allocation24_spill]]  ;;  %s5143_s15 = sld [smem:[#allocation25_spill]] }
 0x6e0   : > { %s5144_s18 = smov %s4171_s19  ;;  %s5145_s19 = smov %s4175_s20 }
 0x6e1   : > { %s5147_s21 = smov %s4183_s22  ;;  %s5148_s22 = smov %s4187_s23 }
 0x6e2   : > { %s5150_s24 = smov %s4199_s26  ;;  %s5151_s25 = smov %s4203_s27 }
 0x6e3   : > { %s5146_s20 = smov %s5140_s8  ;;  %24 = sbr.rel (!%p22_p12) target bundleno = 15 (0xf), region = 168 }
 0x6e4   : > { %s5149_s23 = smov %s5141_s7 }
 0x6e5   : > { %s5152_s26 = smov %s5142_s17  ;;  %s5153_s27 = smov %s5143_s15 }
 0x6ea   :  { %2863 = vsyncpa [#allocation5], 1 }
 0x6eb   :  { %2865 = vsyncpa [#allocation5 + $0x1], 1 }
 0x6ec   :  { %2866 = vsyncpa [#allocation9], 1 }
 0x6ed   :  { %2867 = vsyncpa [#allocation12], 1 }
 0x6ee   :  { %2869 = vsyncpa [#allocation12 + $0x1], 1 }
 0x6ef   :  { %2870 = vsyncpa [#allocation6], 1 }
 0x6f0   :  { %2872 = vsyncpa [#allocation6 + $0x1], 1 }

</bundles_post_ra>
